<compile_context>
chip_gen: v6e
topology: v6e:2x2x1
jax: 0.10.0
libtpu: 0.0.40
codegen_flags: <defaults>
</compile_context>

<pallas_src>
import math
import jax
import jax.numpy as jnp
from jax.experimental import pallas as pl
from jax.experimental.pallas import tpu as pltpu

N_HEAD = 4  # config.n_head


def _layer_norm(x, w, b, eps=1e-5):
    mu = jnp.mean(x, axis=-1, keepdims=True)
    var = jnp.mean((x - mu) ** 2, axis=-1, keepdims=True)
    return (x - mu) * jax.lax.rsqrt(var + eps) * w + b


def _erf(x):
    # Abramowitz & Stegun 7.1.26 (|error| < 1.5e-7): exp/mul/add/div only.
    a1, a2, a3, a4, a5 = (0.254829592, -0.284496736, 1.421413741,
                          -1.453152027, 1.061405429)
    p = 0.3275911
    ax = jnp.abs(x)
    t = 1.0 / (1.0 + p * ax)
    poly = ((((a5 * t + a4) * t + a3) * t + a2) * t + a1) * t
    y = 1.0 - poly * jnp.exp(-ax * ax)
    return jnp.where(x >= 0, y, -y)


def _gelu_exact(x):
    # nn.GELU() default = exact erf-based GELU
    return 0.5 * x * (1.0 + _erf(x * (1.0 / math.sqrt(2.0))))


def block_kernel(x_ref,
                 ln1_w_ref, ln1_b_ref,
                 wqkv_ref, bqkv_ref,
                 wp_ref, bp_ref,
                 ln2_w_ref, ln2_b_ref,
                 w1_ref, b1_ref, w2_ref, b2_ref,
                 o_ref,
                 q_scr, k_scr, v_scr):
    t_idx = pl.program_id(1)

    T = x_ref.shape[1]
    C = x_ref.shape[2]
    TQ = o_ref.shape[1]
    H = q_scr.shape[0]
    D = q_scr.shape[2]
    scale = 1.0 / math.sqrt(D)
    bf16 = jnp.bfloat16

    # ---- step 0 of the T axis: fused QKV for the WHOLE sequence -> scratch ----
    @pl.when(t_idx == 0)
    def _build_qkv():
        x_full = x_ref[0]                                       # (T, C) f32
        xn = _layer_norm(x_full, ln1_w_ref[...], ln1_b_ref[...])
        qkv = jnp.dot(xn.astype(bf16), wqkv_ref[...],
                      preferred_element_type=jnp.float32) + bqkv_ref[...]
        # Head-split once (off the hot path); store head-major bf16 in scratch.
        for h in range(H):
            q_scr[h] = (qkv[:, h * D:(h + 1) * D] * scale).astype(bf16)
            k_scr[h] = qkv[:, C + h * D:C + (h + 1) * D].astype(bf16)
            v_scr[h] = qkv[:, 2 * C + h * D:2 * C + (h + 1) * D].astype(bf16)

    # ------------------------- per row-tile hot path ---------------------------
    q0 = pl.multiple_of(t_idx * TQ, TQ)
    x_t = x_ref[0, pl.ds(q0, TQ), :]                            # (TQ, C) f32
    qh = q_scr[:, pl.ds(q0, TQ), :]                             # (H, TQ, D) bf16

    # attention: single head-batched contraction, no per-head loop
    att = jnp.einsum('hqd,hkd->hqk', qh, k_scr[...],
                     preferred_element_type=jnp.float32)        # (H, TQ, T)
    rows = q0 + jax.lax.broadcasted_iota(jnp.int32, (TQ, T), 0)
    cols = jax.lax.broadcasted_iota(jnp.int32, (TQ, T), 1)
    causal = rows >= cols
    att = jnp.where(causal[None, :, :], att, -jnp.inf)
    m = jnp.max(att, axis=-1, keepdims=True)
    e = jnp.exp(att - m)
    s = jnp.sum(e, axis=-1, keepdims=True)
    p = e * pl.reciprocal(s, approx=True)                       # EUP reciprocal
    y = jnp.einsum('hqk,hkd->hqd', p.astype(bf16), v_scr[...],
                   preferred_element_type=jnp.float32)          # (H, TQ, D)

    # output projection: heads consumed directly (wp is (H, D, C)), no concat
    attn_out = jnp.dot(y[0].astype(bf16), wp_ref[0],
                       preferred_element_type=jnp.float32)
    for h in range(1, H):
        attn_out = attn_out + jnp.dot(y[h].astype(bf16), wp_ref[h],
                                      preferred_element_type=jnp.float32)
    attn_out = attn_out + bp_ref[...]
    x1 = x_t + attn_out                                         # residual 1

    # MLP branch
    xn2 = _layer_norm(x1, ln2_w_ref[...], ln2_b_ref[...])
    h1 = jnp.dot(xn2.astype(bf16), w1_ref[...],
                 preferred_element_type=jnp.float32) + b1_ref[...]
    g = _gelu_exact(h1)
    h2 = jnp.dot(g.astype(bf16), w2_ref[...],
                 preferred_element_type=jnp.float32) + b2_ref[...]
    o_ref[0] = (x1 + h2).astype(o_ref.dtype)                    # residual 2


def transformer_block(x, params):
    B, T, C = x.shape
    H = N_HEAD
    assert C % H == 0
    D = C // H
    TQ = min(T, 128)
    assert T % TQ == 0 and TQ % 8 == 0, "T must be a multiple of the row tile"
    nT = T // TQ
    bf16 = jnp.bfloat16

    # Host-side weight prep: fuse QKV, head-major projection, bf16 MXU weights.
    wqkv = jnp.concatenate([params["wq"], params["wk"], params["wv"]],
                           axis=1).astype(bf16)                 # (C, 3C)
    bqkv = jnp.concatenate([params["bq"], params["bk"], params["bv"]], axis=1)
    wp = params["wp"].reshape(H, D, C).astype(bf16)             # (H, D, C)

    plist = [
        params["ln1_w"], params["ln1_b"],
        wqkv, bqkv,
        wp, params["bp"],
        params["ln2_w"], params["ln2_b"],
        params["w1"].astype(bf16), params["b1"],
        params["w2"].astype(bf16), params["b2"],
    ]

    def param_spec(p):
        return pl.BlockSpec(p.shape, lambda b, t, _n=p.ndim: (0,) * _n)

    in_specs = [pl.BlockSpec((1, T, C), lambda b, t: (b, 0, 0))] + \
               [param_spec(p) for p in plist]

    flops = B * (24 * T * C * C + 4 * T * T * C)
    transcendentals = B * (H * T * T + 4 * T * C)
    bytes_accessed = 8 * B * T * C + 24 * C * C + 64 * C

    return pl.pallas_call(
        block_kernel,
        out_shape=jax.ShapeDtypeStruct((B, T, C), x.dtype),
        grid=(B, nT),
        in_specs=in_specs,
        out_specs=pl.BlockSpec((1, TQ, C), lambda b, t: (b, t, 0)),
        scratch_shapes=[
            pltpu.VMEM((H, T, D), jnp.bfloat16),   # Q (pre-scaled, full sequence)
            pltpu.VMEM((H, T, D), jnp.bfloat16),   # K (resident across T tiles)
            pltpu.VMEM((H, T, D), jnp.bfloat16),   # V (resident across T tiles)
        ],
        compiler_params=pltpu.CompilerParams(
            dimension_semantics=("parallel", "arbitrary"),
            vmem_limit_bytes=32 * 1024 * 1024,
        ),
        cost_estimate=pl.CostEstimate(flops=flops,
                                      transcendentals=transcendentals,
                                      bytes_accessed=bytes_accessed),
    )(x, *plist)


# ---------------------------- pure-JAX reference ------------------------------
def block_reference(x, params):
    B, T, C = x.shape
    D = C // N_HEAD

    def ln(v, w, b, eps=1e-5):
        mu = jnp.mean(v, axis=-1, keepdims=True)
        var = jnp.mean((v - mu) ** 2, axis=-1, keepdims=True)
        return (v - mu) / jnp.sqrt(var + eps) * w + b

    xn = ln(x, params["ln1_w"], params["ln1_b"])
    q = xn @ params["wq"] + params["bq"]
    k = xn @ params["wk"] + params["bk"]
    v = xn @ params["wv"] + params["bv"]
    q = q.reshape(B, T, N_HEAD, D).transpose(0, 2, 1, 3)
    k = k.reshape(B, T, N_HEAD, D).transpose(0, 2, 1, 3)
    v = v.reshape(B, T, N_HEAD, D).transpose(0, 2, 1, 3)
    att = (q @ k.transpose(0, 1, 3, 2)) / math.sqrt(D)
    mask = jnp.tril(jnp.ones((T, T), bool))
    att = jnp.where(mask[None, None], att, -jnp.inf)
    att = jax.nn.softmax(att, axis=-1)
    y = (att @ v).transpose(0, 2, 1, 3).reshape(B, T, C)
    y = y @ params["wp"] + params["bp"]
    x = x + y
    xn2 = ln(x, params["ln2_w"], params["ln2_b"])
    h = xn2 @ params["w1"] + params["b1"]
    h = jax.nn.gelu(h, approximate=False)
    h = h @ params["w2"] + params["b2"]
    return x + h


def make_params(key, C):
    ks = jax.random.split(key, 16)
    n = lambda k, shp, s=0.02: s * jax.random.normal(k, shp, jnp.float32)
    return {
        "ln1_w": 1.0 + n(ks[0], (1, C), 0.1), "ln1_b": n(ks[1], (1, C), 0.1),
        "wq": n(ks[2], (C, C)), "bq": n(ks[3], (1, C)),
        "wk": n(ks[4], (C, C)), "bk": n(ks[5], (1, C)),
        "wv": n(ks[6], (C, C)), "bv": n(ks[7], (1, C)),
        "wp": n(ks[8], (C, C)), "bp": n(ks[9], (1, C)),
        "ln2_w": 1.0 + n(ks[10], (1, C), 0.1), "ln2_b": n(ks[11], (1, C), 0.1),
        "w1": n(ks[12], (C, 4 * C)), "b1": n(ks[13], (1, 4 * C)),
        "w2": n(ks[14], (4 * C, C)), "b2": n(ks[15], (1, C)),
    }


if __name__ == "__main__":
    B, T, C = 2, 8, 32   # batch, block_size (seq), n_embd; n_head = 4
    key = jax.random.PRNGKey(0)
    kx, kp = jax.random.split(key)
    x = jax.random.normal(kx, (B, T, C), jnp.float32)
    params = make_params(kp, C)

    out = jax.block_until_ready(transformer_block(x, params))
    ref = jax.block_until_ready(block_reference(x, params))

    assert out.shape == (B, T, C)
    err = float(jnp.max(jnp.abs(out - ref)))
    # bf16 MXU operands (f32 accumulation) vs. pure-f32 reference: relaxed tol.
    assert err < 2e-2, f"max abs err {err}"
    print("KERNEL_OK")
</pallas_src>

<mosaic_0001>
module attributes {stable_mosaic.version = 11 : i64} {
  func.func @block_kernel(%arg0: i32, %arg1: i32, %arg2: memref<1x8x32xf32, #tpu.memory_space<vmem>>, %arg3: memref<1x32xf32, #tpu.memory_space<vmem>>, %arg4: memref<1x32xf32, #tpu.memory_space<vmem>>, %arg5: memref<32x96xbf16, #tpu.memory_space<vmem>>, %arg6: memref<1x96xf32, #tpu.memory_space<vmem>>, %arg7: memref<4x8x32xbf16, #tpu.memory_space<vmem>>, %arg8: memref<1x32xf32, #tpu.memory_space<vmem>>, %arg9: memref<1x32xf32, #tpu.memory_space<vmem>>, %arg10: memref<1x32xf32, #tpu.memory_space<vmem>>, %arg11: memref<32x128xbf16, #tpu.memory_space<vmem>>, %arg12: memref<1x128xf32, #tpu.memory_space<vmem>>, %arg13: memref<128x32xbf16, #tpu.memory_space<vmem>>, %arg14: memref<1x32xf32, #tpu.memory_space<vmem>>, %arg15: memref<1x8x32xf32, #tpu.memory_space<vmem>>, %arg16: memref<4x8x8xbf16, #tpu.memory_space<vmem>>, %arg17: memref<4x8x8xbf16, #tpu.memory_space<vmem>>, %arg18: memref<4x8x8xbf16, #tpu.memory_space<vmem>>) attributes {dimension_semantics = [#tpu.dimension_semantics<parallel>, #tpu.dimension_semantics<arbitrary>], iteration_bounds = array<i64: 2, 1>, scalar_prefetch = 0 : i64, scratch_operands = 3 : i64, tpu.core_type = #tpu.core_type<tc>, window_params = [{transform_indices = @transform_0, window_bounds = array<i64: 1, 8, 32>}, {pipeline_mode = #tpu.pipeline_mode<synchronous>, transform_indices = @transform_1, window_bounds = array<i64: 1, 32>}, {pipeline_mode = #tpu.pipeline_mode<synchronous>, transform_indices = @transform_2, window_bounds = array<i64: 1, 32>}, {pipeline_mode = #tpu.pipeline_mode<synchronous>, transform_indices = @transform_3, window_bounds = array<i64: 32, 96>}, {pipeline_mode = #tpu.pipeline_mode<synchronous>, transform_indices = @transform_4, window_bounds = array<i64: 1, 96>}, {pipeline_mode = #tpu.pipeline_mode<synchronous>, transform_indices = @transform_5, window_bounds = array<i64: 4, 8, 32>}, {pipeline_mode = #tpu.pipeline_mode<synchronous>, transform_indices = @transform_6, window_bounds = array<i64: 1, 32>}, {pipeline_mode = #tpu.pipeline_mode<synchronous>, transform_indices = @transform_7, window_bounds = array<i64: 1, 32>}, {pipeline_mode = #tpu.pipeline_mode<synchronous>, transform_indices = @transform_8, window_bounds = array<i64: 1, 32>}, {pipeline_mode = #tpu.pipeline_mode<synchronous>, transform_indices = @transform_9, window_bounds = array<i64: 32, 128>}, {pipeline_mode = #tpu.pipeline_mode<synchronous>, transform_indices = @transform_10, window_bounds = array<i64: 1, 128>}, {pipeline_mode = #tpu.pipeline_mode<synchronous>, transform_indices = @transform_11, window_bounds = array<i64: 128, 32>}, {pipeline_mode = #tpu.pipeline_mode<synchronous>, transform_indices = @transform_12, window_bounds = array<i64: 1, 32>}, {transform_indices = @transform_13, window_bounds = array<i64: 1, 8, 32>}]} {
    %c0_i32 = arith.constant 0 : i32
    %0 = arith.cmpi eq, %arg1, %c0_i32 : i32
    %1 = arith.extui %0 : i1 to i32
    %c0_i32_0 = arith.constant 0 : i32
    %2 = arith.cmpi ne, %1, %c0_i32_0 : i32
    scf.if %2 {
      %c0_66 = arith.constant 0 : index
      %c0_67 = arith.constant 0 : index
      %c0_68 = arith.constant 0 : index
      %146 = vector.load %arg2[%c0_66, %c0_67, %c0_68] : memref<1x8x32xf32, #tpu.memory_space<vmem>>, vector<1x8x32xf32>
      %147 = vector.shape_cast %146 : vector<1x8x32xf32> to vector<8x32xf32>
      %c0_69 = arith.constant 0 : index
      %c0_70 = arith.constant 0 : index
      %148 = vector.load %arg3[%c0_69, %c0_70] : memref<1x32xf32, #tpu.memory_space<vmem>>, vector<1x32xf32>
      %c0_71 = arith.constant 0 : index
      %c0_72 = arith.constant 0 : index
      %149 = vector.load %arg4[%c0_71, %c0_72] : memref<1x32xf32, #tpu.memory_space<vmem>>, vector<1x32xf32>
      %cst_73 = arith.constant dense<0.000000e+00> : vector<8xf32>
      %150 = vector.multi_reduction <add>, %147, %cst_73 [1] : vector<8x32xf32> to vector<8xf32>
      %151 = vector.shape_cast %150 : vector<8xf32> to vector<8x1xf32>
      %cst_74 = arith.constant 3.200000e+01 : f32
      %152 = vector.broadcast %cst_74 : f32 to vector<8x1xf32>
      %153 = arith.divf %151, %152 : vector<8x1xf32>
      %154 = vector.broadcast %153 : vector<8x1xf32> to vector<8x32xf32>
      %155 = arith.subf %147, %154 : vector<8x32xf32>
      %156 = arith.mulf %155, %155 : vector<8x32xf32>
      %cst_75 = arith.constant dense<0.000000e+00> : vector<8xf32>
      %157 = vector.multi_reduction <add>, %156, %cst_75 [1] : vector<8x32xf32> to vector<8xf32>
      %158 = vector.shape_cast %157 : vector<8xf32> to vector<8x1xf32>
      %cst_76 = arith.constant 3.200000e+01 : f32
      %159 = vector.broadcast %cst_76 : f32 to vector<8x1xf32>
      %160 = arith.divf %158, %159 : vector<8x1xf32>
      %161 = vector.broadcast %153 : vector<8x1xf32> to vector<8x32xf32>
      %162 = arith.subf %147, %161 : vector<8x32xf32>
      %cst_77 = arith.constant 9.99999974E-6 : f32
      %163 = vector.broadcast %cst_77 : f32 to vector<8x1xf32>
      %164 = arith.addf %160, %163 : vector<8x1xf32>
      %165 = math.rsqrt %164 : vector<8x1xf32>
      %166 = vector.broadcast %165 : vector<8x1xf32> to vector<8x32xf32>
      %167 = arith.mulf %162, %166 : vector<8x32xf32>
      %168 = vector.broadcast %148 : vector<1x32xf32> to vector<8x32xf32>
      %169 = arith.mulf %167, %168 : vector<8x32xf32>
      %170 = vector.broadcast %149 : vector<1x32xf32> to vector<8x32xf32>
      %171 = arith.addf %169, %170 : vector<8x32xf32>
      %172 = arith.truncf %171 : vector<8x32xf32> to vector<8x32xbf16>
      %c0_78 = arith.constant 0 : index
      %c0_79 = arith.constant 0 : index
      %173 = vector.load %arg5[%c0_78, %c0_79] : memref<32x96xbf16, #tpu.memory_space<vmem>>, vector<32x96xbf16>
      %cst_80 = arith.constant dense<0.000000e+00> : vector<8x96xf32>
      %174 = tpu.matmul %172, %173, %cst_80 {dimension_numbers = #tpu.dot_dimension_numbers<[1], [0], [0], [1], [0, 0, 1, 1], [], []>} : vector<8x32xbf16>, vector<32x96xbf16>, vector<8x96xf32> -> vector<8x96xf32>
      %c0_81 = arith.constant 0 : index
      %c0_82 = arith.constant 0 : index
      %175 = vector.load %arg6[%c0_81, %c0_82] : memref<1x96xf32, #tpu.memory_space<vmem>>, vector<1x96xf32>
      %176 = vector.broadcast %175 : vector<1x96xf32> to vector<8x96xf32>
      %177 = arith.addf %174, %176 : vector<8x96xf32>
      %178 = vector.extract_strided_slice %177 {offsets = [0, 0], sizes = [8, 8], strides = [1, 1]} : vector<8x96xf32> to vector<8x8xf32>
      %cst_83 = arith.constant 0.353553385 : f32
      %179 = vector.broadcast %cst_83 : f32 to vector<8x8xf32>
      %180 = arith.mulf %178, %179 : vector<8x8xf32>
      %181 = arith.truncf %180 : vector<8x8xf32> to vector<8x8xbf16>
      %c0_84 = arith.constant 0 : index
      %c0_85 = arith.constant 0 : index
      %c0_86 = arith.constant 0 : index
      %182 = vector.load %arg16[%c0_84, %c0_85, %c0_86] : memref<4x8x8xbf16, #tpu.memory_space<vmem>>, vector<1x8x8xbf16>
      %183 = vector.shape_cast %182 : vector<1x8x8xbf16> to vector<8x8xbf16>
      %184 = vector.shape_cast %181 : vector<8x8xbf16> to vector<1x8x8xbf16>
      tpu.vector_store %arg16[%c0_84, %c0_85, %c0_86], %184 {strides = array<i32>} : memref<4x8x8xbf16, #tpu.memory_space<vmem>>, vector<1x8x8xbf16>,
      %185 = vector.extract_strided_slice %177 {offsets = [0, 32], sizes = [8, 8], strides = [1, 1]} : vector<8x96xf32> to vector<8x8xf32>
      %186 = arith.truncf %185 : vector<8x8xf32> to vector<8x8xbf16>
      %c0_87 = arith.constant 0 : index
      %c0_88 = arith.constant 0 : index
      %c0_89 = arith.constant 0 : index
      %187 = vector.load %arg17[%c0_87, %c0_88, %c0_89] : memref<4x8x8xbf16, #tpu.memory_space<vmem>>, vector<1x8x8xbf16>
      %188 = vector.shape_cast %187 : vector<1x8x8xbf16> to vector<8x8xbf16>
      %189 = vector.shape_cast %186 : vector<8x8xbf16> to vector<1x8x8xbf16>
      tpu.vector_store %arg17[%c0_87, %c0_88, %c0_89], %189 {strides = array<i32>} : memref<4x8x8xbf16, #tpu.memory_space<vmem>>, vector<1x8x8xbf16>,
      %190 = vector.extract_strided_slice %177 {offsets = [0, 64], sizes = [8, 8], strides = [1, 1]} : vector<8x96xf32> to vector<8x8xf32>
      %191 = arith.truncf %190 : vector<8x8xf32> to vector<8x8xbf16>
      %c0_90 = arith.constant 0 : index
      %c0_91 = arith.constant 0 : index
      %c0_92 = arith.constant 0 : index
      %192 = vector.load %arg18[%c0_90, %c0_91, %c0_92] : memref<4x8x8xbf16, #tpu.memory_space<vmem>>, vector<1x8x8xbf16>
      %193 = vector.shape_cast %192 : vector<1x8x8xbf16> to vector<8x8xbf16>
      %194 = vector.shape_cast %191 : vector<8x8xbf16> to vector<1x8x8xbf16>
      tpu.vector_store %arg18[%c0_90, %c0_91, %c0_92], %194 {strides = array<i32>} : memref<4x8x8xbf16, #tpu.memory_space<vmem>>, vector<1x8x8xbf16>,
      %195 = vector.extract_strided_slice %177 {offsets = [0, 8], sizes = [8, 8], strides = [1, 1]} : vector<8x96xf32> to vector<8x8xf32>
      %cst_93 = arith.constant 0.353553385 : f32
      %196 = vector.broadcast %cst_93 : f32 to vector<8x8xf32>
      %197 = arith.mulf %195, %196 : vector<8x8xf32>
      %198 = arith.truncf %197 : vector<8x8xf32> to vector<8x8xbf16>
      %c1_94 = arith.constant 1 : index
      %c0_95 = arith.constant 0 : index
      %c0_96 = arith.constant 0 : index
      %199 = vector.load %arg16[%c1_94, %c0_95, %c0_96] : memref<4x8x8xbf16, #tpu.memory_space<vmem>>, vector<1x8x8xbf16>
      %200 = vector.shape_cast %199 : vector<1x8x8xbf16> to vector<8x8xbf16>
      %201 = vector.shape_cast %198 : vector<8x8xbf16> to vector<1x8x8xbf16>
      tpu.vector_store %arg16[%c1_94, %c0_95, %c0_96], %201 {strides = array<i32>} : memref<4x8x8xbf16, #tpu.memory_space<vmem>>, vector<1x8x8xbf16>,
      %202 = vector.extract_strided_slice %177 {offsets = [0, 40], sizes = [8, 8], strides = [1, 1]} : vector<8x96xf32> to vector<8x8xf32>
      %203 = arith.truncf %202 : vector<8x8xf32> to vector<8x8xbf16>
      %c1_97 = arith.constant 1 : index
      %c0_98 = arith.constant 0 : index
      %c0_99 = arith.constant 0 : index
      %204 = vector.load %arg17[%c1_97, %c0_98, %c0_99] : memref<4x8x8xbf16, #tpu.memory_space<vmem>>, vector<1x8x8xbf16>
      %205 = vector.shape_cast %204 : vector<1x8x8xbf16> to vector<8x8xbf16>
      %206 = vector.shape_cast %203 : vector<8x8xbf16> to vector<1x8x8xbf16>
      tpu.vector_store %arg17[%c1_97, %c0_98, %c0_99], %206 {strides = array<i32>} : memref<4x8x8xbf16, #tpu.memory_space<vmem>>, vector<1x8x8xbf16>,
      %207 = vector.extract_strided_slice %177 {offsets = [0, 72], sizes = [8, 8], strides = [1, 1]} : vector<8x96xf32> to vector<8x8xf32>
      %208 = arith.truncf %207 : vector<8x8xf32> to vector<8x8xbf16>
      %c1_100 = arith.constant 1 : index
      %c0_101 = arith.constant 0 : index
      %c0_102 = arith.constant 0 : index
      %209 = vector.load %arg18[%c1_100, %c0_101, %c0_102] : memref<4x8x8xbf16, #tpu.memory_space<vmem>>, vector<1x8x8xbf16>
      %210 = vector.shape_cast %209 : vector<1x8x8xbf16> to vector<8x8xbf16>
      %211 = vector.shape_cast %208 : vector<8x8xbf16> to vector<1x8x8xbf16>
      tpu.vector_store %arg18[%c1_100, %c0_101, %c0_102], %211 {strides = array<i32>} : memref<4x8x8xbf16, #tpu.memory_space<vmem>>, vector<1x8x8xbf16>,
      %212 = vector.extract_strided_slice %177 {offsets = [0, 16], sizes = [8, 8], strides = [1, 1]} : vector<8x96xf32> to vector<8x8xf32>
      %cst_103 = arith.constant 0.353553385 : f32
      %213 = vector.broadcast %cst_103 : f32 to vector<8x8xf32>
      %214 = arith.mulf %212, %213 : vector<8x8xf32>
      %215 = arith.truncf %214 : vector<8x8xf32> to vector<8x8xbf16>
      %c2_104 = arith.constant 2 : index
      %c0_105 = arith.constant 0 : index
      %c0_106 = arith.constant 0 : index
      %216 = vector.load %arg16[%c2_104, %c0_105, %c0_106] : memref<4x8x8xbf16, #tpu.memory_space<vmem>>, vector<1x8x8xbf16>
      %217 = vector.shape_cast %216 : vector<1x8x8xbf16> to vector<8x8xbf16>
      %218 = vector.shape_cast %215 : vector<8x8xbf16> to vector<1x8x8xbf16>
      tpu.vector_store %arg16[%c2_104, %c0_105, %c0_106], %218 {strides = array<i32>} : memref<4x8x8xbf16, #tpu.memory_space<vmem>>, vector<1x8x8xbf16>,
      %219 = vector.extract_strided_slice %177 {offsets = [0, 48], sizes = [8, 8], strides = [1, 1]} : vector<8x96xf32> to vector<8x8xf32>
      %220 = arith.truncf %219 : vector<8x8xf32> to vector<8x8xbf16>
      %c2_107 = arith.constant 2 : index
      %c0_108 = arith.constant 0 : index
      %c0_109 = arith.constant 0 : index
      %221 = vector.load %arg17[%c2_107, %c0_108, %c0_109] : memref<4x8x8xbf16, #tpu.memory_space<vmem>>, vector<1x8x8xbf16>
      %222 = vector.shape_cast %221 : vector<1x8x8xbf16> to vector<8x8xbf16>
      %223 = vector.shape_cast %220 : vector<8x8xbf16> to vector<1x8x8xbf16>
      tpu.vector_store %arg17[%c2_107, %c0_108, %c0_109], %223 {strides = array<i32>} : memref<4x8x8xbf16, #tpu.memory_space<vmem>>, vector<1x8x8xbf16>,
      %224 = vector.extract_strided_slice %177 {offsets = [0, 80], sizes = [8, 8], strides = [1, 1]} : vector<8x96xf32> to vector<8x8xf32>
      %225 = arith.truncf %224 : vector<8x8xf32> to vector<8x8xbf16>
      %c2_110 = arith.constant 2 : index
      %c0_111 = arith.constant 0 : index
      %c0_112 = arith.constant 0 : index
      %226 = vector.load %arg18[%c2_110, %c0_111, %c0_112] : memref<4x8x8xbf16, #tpu.memory_space<vmem>>, vector<1x8x8xbf16>
      %227 = vector.shape_cast %226 : vector<1x8x8xbf16> to vector<8x8xbf16>
      %228 = vector.shape_cast %225 : vector<8x8xbf16> to vector<1x8x8xbf16>
      tpu.vector_store %arg18[%c2_110, %c0_111, %c0_112], %228 {strides = array<i32>} : memref<4x8x8xbf16, #tpu.memory_space<vmem>>, vector<1x8x8xbf16>,
      %229 = vector.extract_strided_slice %177 {offsets = [0, 24], sizes = [8, 8], strides = [1, 1]} : vector<8x96xf32> to vector<8x8xf32>
      %cst_113 = arith.constant 0.353553385 : f32
      %230 = vector.broadcast %cst_113 : f32 to vector<8x8xf32>
      %231 = arith.mulf %229, %230 : vector<8x8xf32>
      %232 = arith.truncf %231 : vector<8x8xf32> to vector<8x8xbf16>
      %c3_114 = arith.constant 3 : index
      %c0_115 = arith.constant 0 : index
      %c0_116 = arith.constant 0 : index
      %233 = vector.load %arg16[%c3_114, %c0_115, %c0_116] : memref<4x8x8xbf16, #tpu.memory_space<vmem>>, vector<1x8x8xbf16>
      %234 = vector.shape_cast %233 : vector<1x8x8xbf16> to vector<8x8xbf16>
      %235 = vector.shape_cast %232 : vector<8x8xbf16> to vector<1x8x8xbf16>
      tpu.vector_store %arg16[%c3_114, %c0_115, %c0_116], %235 {strides = array<i32>} : memref<4x8x8xbf16, #tpu.memory_space<vmem>>, vector<1x8x8xbf16>,
      %236 = vector.extract_strided_slice %177 {offsets = [0, 56], sizes = [8, 8], strides = [1, 1]} : vector<8x96xf32> to vector<8x8xf32>
      %237 = arith.truncf %236 : vector<8x8xf32> to vector<8x8xbf16>
      %c3_117 = arith.constant 3 : index
      %c0_118 = arith.constant 0 : index
      %c0_119 = arith.constant 0 : index
      %238 = vector.load %arg17[%c3_117, %c0_118, %c0_119] : memref<4x8x8xbf16, #tpu.memory_space<vmem>>, vector<1x8x8xbf16>
      %239 = vector.shape_cast %238 : vector<1x8x8xbf16> to vector<8x8xbf16>
      %240 = vector.shape_cast %237 : vector<8x8xbf16> to vector<1x8x8xbf16>
      tpu.vector_store %arg17[%c3_117, %c0_118, %c0_119], %240 {strides = array<i32>} : memref<4x8x8xbf16, #tpu.memory_space<vmem>>, vector<1x8x8xbf16>,
      %241 = vector.extract_strided_slice %177 {offsets = [0, 88], sizes = [8, 8], strides = [1, 1]} : vector<8x96xf32> to vector<8x8xf32>
      %242 = arith.truncf %241 : vector<8x8xf32> to vector<8x8xbf16>
      %c3_120 = arith.constant 3 : index
      %c0_121 = arith.constant 0 : index
      %c0_122 = arith.constant 0 : index
      %243 = vector.load %arg18[%c3_120, %c0_121, %c0_122] : memref<4x8x8xbf16, #tpu.memory_space<vmem>>, vector<1x8x8xbf16>
      %244 = vector.shape_cast %243 : vector<1x8x8xbf16> to vector<8x8xbf16>
      %245 = vector.shape_cast %242 : vector<8x8xbf16> to vector<1x8x8xbf16>
      tpu.vector_store %arg18[%c3_120, %c0_121, %c0_122], %245 {strides = array<i32>} : memref<4x8x8xbf16, #tpu.memory_space<vmem>>, vector<1x8x8xbf16>,
    } else {
    }
    %c8_i32 = arith.constant 8 : i32
    %3 = arith.muli %arg1, %c8_i32 : i32
    %4 = tpu.assume_multiple %3, 8 : i32
    %c0 = arith.constant 0 : index
    %5 = arith.index_cast %4 : i32 to index
    %c0_1 = arith.constant 0 : index
    %6 = vector.load %arg2[%c0, %5, %c0_1] : memref<1x8x32xf32, #tpu.memory_space<vmem>>, vector<1x8x32xf32>
    %7 = vector.shape_cast %6 : vector<1x8x32xf32> to vector<8x32xf32>
    %c0_2 = arith.constant 0 : index
    %8 = arith.index_cast %4 : i32 to index
    %c0_3 = arith.constant 0 : index
    %9 = vector.load %arg16[%c0_2, %8, %c0_3] : memref<4x8x8xbf16, #tpu.memory_space<vmem>>, vector<4x8x8xbf16>
    %c0_4 = arith.constant 0 : index
    %c0_5 = arith.constant 0 : index
    %c0_6 = arith.constant 0 : index
    %10 = vector.load %arg17[%c0_4, %c0_5, %c0_6] : memref<4x8x8xbf16, #tpu.memory_space<vmem>>, vector<4x8x8xbf16>
    "tpu.trace_start"() <{level = 10 : i32, message = "hqd,hkd->hqk"}> : () -> ()
    %cst = arith.constant dense<0.000000e+00> : vector<4x8x8xf32>
    %11 = tpu.matmul %9, %10, %cst {dimension_numbers = #tpu.dot_dimension_numbers<[2], [2], [1], [1], [0, 0, 0, 1, 1, 1], [0], [0]>} : vector<4x8x8xbf16>, vector<4x8x8xbf16>, vector<4x8x8xf32> -> vector<4x8x8xf32>
    "tpu.trace_stop"() : () -> ()
    %12 = tpu.iota {dimensions = array<i32: 0>} : vector<8x8xi32>
    %13 = vector.broadcast %4 : i32 to vector<8x8xi32>
    %14 = arith.addi %13, %12 : vector<8x8xi32>
    %15 = tpu.iota {dimensions = array<i32: 1>} : vector<8x8xi32>
    %16 = arith.cmpi sge, %14, %15 : vector<8x8xi32>
    %17 = vector.shape_cast %16 : vector<8x8xi1> to vector<1x8x8xi1>
    %cst_7 = arith.constant 0xFF800000 : f32
    %18 = vector.shape_cast %17 : vector<1x8x8xi1> to vector<1x8x8xi1>
    %19 = vector.broadcast %18 : vector<1x8x8xi1> to vector<4x8x8xi1>
    %20 = vector.broadcast %cst_7 : f32 to vector<4x8x8xf32>
    %21 = arith.select %19, %11, %20 : vector<4x8x8xi1>, vector<4x8x8xf32>
    %cst_8 = arith.constant dense<0xFF800000> : vector<4x8xf32>
    %22 = vector.multi_reduction <maximumf>, %21, %cst_8 [2] : vector<4x8x8xf32> to vector<4x8xf32>
    %23 = vector.shape_cast %22 : vector<4x8xf32> to vector<4x8x1xf32>
    %24 = vector.broadcast %23 : vector<4x8x1xf32> to vector<4x8x8xf32>
    %25 = arith.subf %21, %24 : vector<4x8x8xf32>
    %26 = math.exp %25 : vector<4x8x8xf32>
    %cst_9 = arith.constant dense<0.000000e+00> : vector<4x8xf32>
    %27 = vector.multi_reduction <add>, %26, %cst_9 [2] : vector<4x8x8xf32> to vector<4x8xf32>
    %28 = vector.shape_cast %27 : vector<4x8xf32> to vector<4x8x1xf32>
    %29 = tpu.reciprocal %28 {approx = true} : vector<4x8x1xf32> -> vector<4x8x1xf32>
    %30 = vector.broadcast %29 : vector<4x8x1xf32> to vector<4x8x8xf32>
    %31 = arith.mulf %26, %30 : vector<4x8x8xf32>
    %32 = arith.truncf %31 : vector<4x8x8xf32> to vector<4x8x8xbf16>
    %c0_10 = arith.constant 0 : index
    %c0_11 = arith.constant 0 : index
    %c0_12 = arith.constant 0 : index
    %33 = vector.load %arg18[%c0_10, %c0_11, %c0_12] : memref<4x8x8xbf16, #tpu.memory_space<vmem>>, vector<4x8x8xbf16>
    "tpu.trace_start"() <{level = 10 : i32, message = "hqk,hkd->hqd"}> : () -> ()
    %cst_13 = arith.constant dense<0.000000e+00> : vector<4x8x8xf32>
    %34 = tpu.matmul %32, %33, %cst_13 {dimension_numbers = #tpu.dot_dimension_numbers<[2], [1], [1], [2], [0, 0, 0, 1, 1, 2], [0], [0]>} : vector<4x8x8xbf16>, vector<4x8x8xbf16>, vector<4x8x8xf32> -> vector<4x8x8xf32>
    "tpu.trace_stop"() : () -> ()
    %35 = vector.extract_strided_slice %34 {offsets = [0, 0, 0], sizes = [1, 8, 8], strides = [1, 1, 1]} : vector<4x8x8xf32> to vector<1x8x8xf32>
    %36 = vector.shape_cast %35 : vector<1x8x8xf32> to vector<8x8xf32>
    %37 = arith.truncf %36 : vector<8x8xf32> to vector<8x8xbf16>
    %c0_14 = arith.constant 0 : index
    %c0_15 = arith.constant 0 : index
    %c0_16 = arith.constant 0 : index
    %38 = vector.load %arg7[%c0_14, %c0_15, %c0_16] : memref<4x8x32xbf16, #tpu.memory_space<vmem>>, vector<1x8x32xbf16>
    %39 = vector.shape_cast %38 : vector<1x8x32xbf16> to vector<8x32xbf16>
    %cst_17 = arith.constant dense<0.000000e+00> : vector<8x32xf32>
    %40 = tpu.matmul %37, %39, %cst_17 {dimension_numbers = #tpu.dot_dimension_numbers<[1], [0], [0], [1], [0, 0, 1, 1], [], []>} : vector<8x8xbf16>, vector<8x32xbf16>, vector<8x32xf32> -> vector<8x32xf32>
    %41 = vector.extract_strided_slice %34 {offsets = [1, 0, 0], sizes = [1, 8, 8], strides = [1, 1, 1]} : vector<4x8x8xf32> to vector<1x8x8xf32>
    %42 = vector.shape_cast %41 : vector<1x8x8xf32> to vector<8x8xf32>
    %43 = arith.truncf %42 : vector<8x8xf32> to vector<8x8xbf16>
    %c1 = arith.constant 1 : index
    %c0_18 = arith.constant 0 : index
    %c0_19 = arith.constant 0 : index
    %44 = vector.load %arg7[%c1, %c0_18, %c0_19] : memref<4x8x32xbf16, #tpu.memory_space<vmem>>, vector<1x8x32xbf16>
    %45 = vector.shape_cast %44 : vector<1x8x32xbf16> to vector<8x32xbf16>
    %cst_20 = arith.constant dense<0.000000e+00> : vector<8x32xf32>
    %46 = tpu.matmul %43, %45, %cst_20 {dimension_numbers = #tpu.dot_dimension_numbers<[1], [0], [0], [1], [0, 0, 1, 1], [], []>} : vector<8x8xbf16>, vector<8x32xbf16>, vector<8x32xf32> -> vector<8x32xf32>
    %47 = arith.addf %40, %46 : vector<8x32xf32>
    %48 = vector.extract_strided_slice %34 {offsets = [2, 0, 0], sizes = [1, 8, 8], strides = [1, 1, 1]} : vector<4x8x8xf32> to vector<1x8x8xf32>
    %49 = vector.shape_cast %48 : vector<1x8x8xf32> to vector<8x8xf32>
    %50 = arith.truncf %49 : vector<8x8xf32> to vector<8x8xbf16>
    %c2 = arith.constant 2 : index
    %c0_21 = arith.constant 0 : index
    %c0_22 = arith.constant 0 : index
    %51 = vector.load %arg7[%c2, %c0_21, %c0_22] : memref<4x8x32xbf16, #tpu.memory_space<vmem>>, vector<1x8x32xbf16>
    %52 = vector.shape_cast %51 : vector<1x8x32xbf16> to vector<8x32xbf16>
    %cst_23 = arith.constant dense<0.000000e+00> : vector<8x32xf32>
    %53 = tpu.matmul %50, %52, %cst_23 {dimension_numbers = #tpu.dot_dimension_numbers<[1], [0], [0], [1], [0, 0, 1, 1], [], []>} : vector<8x8xbf16>, vector<8x32xbf16>, vector<8x32xf32> -> vector<8x32xf32>
    %54 = arith.addf %47, %53 : vector<8x32xf32>
    %55 = vector.extract_strided_slice %34 {offsets = [3, 0, 0], sizes = [1, 8, 8], strides = [1, 1, 1]} : vector<4x8x8xf32> to vector<1x8x8xf32>
    %56 = vector.shape_cast %55 : vector<1x8x8xf32> to vector<8x8xf32>
    %57 = arith.truncf %56 : vector<8x8xf32> to vector<8x8xbf16>
    %c3 = arith.constant 3 : index
    %c0_24 = arith.constant 0 : index
    %c0_25 = arith.constant 0 : index
    %58 = vector.load %arg7[%c3, %c0_24, %c0_25] : memref<4x8x32xbf16, #tpu.memory_space<vmem>>, vector<1x8x32xbf16>
    %59 = vector.shape_cast %58 : vector<1x8x32xbf16> to vector<8x32xbf16>
    %cst_26 = arith.constant dense<0.000000e+00> : vector<8x32xf32>
    %60 = tpu.matmul %57, %59, %cst_26 {dimension_numbers = #tpu.dot_dimension_numbers<[1], [0], [0], [1], [0, 0, 1, 1], [], []>} : vector<8x8xbf16>, vector<8x32xbf16>, vector<8x32xf32> -> vector<8x32xf32>
    %61 = arith.addf %54, %60 : vector<8x32xf32>
    %c0_27 = arith.constant 0 : index
    %c0_28 = arith.constant 0 : index
    %62 = vector.load %arg8[%c0_27, %c0_28] : memref<1x32xf32, #tpu.memory_space<vmem>>, vector<1x32xf32>
    %63 = vector.broadcast %62 : vector<1x32xf32> to vector<8x32xf32>
    %64 = arith.addf %61, %63 : vector<8x32xf32>
    %65 = arith.addf %7, %64 : vector<8x32xf32>
    %c0_29 = arith.constant 0 : index
    %c0_30 = arith.constant 0 : index
    %66 = vector.load %arg9[%c0_29, %c0_30] : memref<1x32xf32, #tpu.memory_space<vmem>>, vector<1x32xf32>
    %c0_31 = arith.constant 0 : index
    %c0_32 = arith.constant 0 : index
    %67 = vector.load %arg10[%c0_31, %c0_32] : memref<1x32xf32, #tpu.memory_space<vmem>>, vector<1x32xf32>
    %cst_33 = arith.constant dense<0.000000e+00> : vector<8xf32>
    %68 = vector.multi_reduction <add>, %65, %cst_33 [1] : vector<8x32xf32> to vector<8xf32>
    %69 = vector.shape_cast %68 : vector<8xf32> to vector<8x1xf32>
    %cst_34 = arith.constant 3.200000e+01 : f32
    %70 = vector.broadcast %cst_34 : f32 to vector<8x1xf32>
    %71 = arith.divf %69, %70 : vector<8x1xf32>
    %72 = vector.broadcast %71 : vector<8x1xf32> to vector<8x32xf32>
    %73 = arith.subf %65, %72 : vector<8x32xf32>
    %74 = arith.mulf %73, %73 : vector<8x32xf32>
    %cst_35 = arith.constant dense<0.000000e+00> : vector<8xf32>
    %75 = vector.multi_reduction <add>, %74, %cst_35 [1] : vector<8x32xf32> to vector<8xf32>
    %76 = vector.shape_cast %75 : vector<8xf32> to vector<8x1xf32>
    %cst_36 = arith.constant 3.200000e+01 : f32
    %77 = vector.broadcast %cst_36 : f32 to vector<8x1xf32>
    %78 = arith.divf %76, %77 : vector<8x1xf32>
    %79 = vector.broadcast %71 : vector<8x1xf32> to vector<8x32xf32>
    %80 = arith.subf %65, %79 : vector<8x32xf32>
    %cst_37 = arith.constant 9.99999974E-6 : f32
    %81 = vector.broadcast %cst_37 : f32 to vector<8x1xf32>
    %82 = arith.addf %78, %81 : vector<8x1xf32>
    %83 = math.rsqrt %82 : vector<8x1xf32>
    %84 = vector.broadcast %83 : vector<8x1xf32> to vector<8x32xf32>
    %85 = arith.mulf %80, %84 : vector<8x32xf32>
    %86 = vector.broadcast %66 : vector<1x32xf32> to vector<8x32xf32>
    %87 = arith.mulf %85, %86 : vector<8x32xf32>
    %88 = vector.broadcast %67 : vector<1x32xf32> to vector<8x32xf32>
    %89 = arith.addf %87, %88 : vector<8x32xf32>
    %90 = arith.truncf %89 : vector<8x32xf32> to vector<8x32xbf16>
    %c0_38 = arith.constant 0 : index
    %c0_39 = arith.constant 0 : index
    %91 = vector.load %arg11[%c0_38, %c0_39] : memref<32x128xbf16, #tpu.memory_space<vmem>>, vector<32x128xbf16>
    %cst_40 = arith.constant dense<0.000000e+00> : vector<8x128xf32>
    %92 = tpu.matmul %90, %91, %cst_40 {dimension_numbers = #tpu.dot_dimension_numbers<[1], [0], [0], [1], [0, 0, 1, 1], [], []>} : vector<8x32xbf16>, vector<32x128xbf16>, vector<8x128xf32> -> vector<8x128xf32>
    %c0_41 = arith.constant 0 : index
    %c0_42 = arith.constant 0 : index
    %93 = vector.load %arg12[%c0_41, %c0_42] : memref<1x128xf32, #tpu.memory_space<vmem>>, vector<1x128xf32>
    %94 = vector.broadcast %93 : vector<1x128xf32> to vector<8x128xf32>
    %95 = arith.addf %92, %94 : vector<8x128xf32>
    %cst_43 = arith.constant 5.000000e-01 : f32
    %96 = vector.broadcast %cst_43 : f32 to vector<8x128xf32>
    %97 = arith.mulf %96, %95 : vector<8x128xf32>
    %cst_44 = arith.constant 0.707106769 : f32
    %98 = vector.broadcast %cst_44 : f32 to vector<8x128xf32>
    %99 = arith.mulf %95, %98 : vector<8x128xf32>
    %100 = math.absf %99 : vector<8x128xf32>
    %cst_45 = arith.constant 0.327591091 : f32
    %101 = vector.broadcast %cst_45 : f32 to vector<8x128xf32>
    %102 = arith.mulf %101, %100 : vector<8x128xf32>
    %cst_46 = arith.constant 1.000000e+00 : f32
    %103 = vector.broadcast %cst_46 : f32 to vector<8x128xf32>
    %104 = arith.addf %103, %102 : vector<8x128xf32>
    %cst_47 = arith.constant 1.000000e+00 : f32
    %105 = vector.broadcast %cst_47 : f32 to vector<8x128xf32>
    %106 = arith.divf %105, %104 : vector<8x128xf32>
    %cst_48 = arith.constant 1.06140542 : f32
    %107 = vector.broadcast %cst_48 : f32 to vector<8x128xf32>
    %108 = arith.mulf %107, %106 : vector<8x128xf32>
    %cst_49 = arith.constant -1.45315206 : f32
    %109 = vector.broadcast %cst_49 : f32 to vector<8x128xf32>
    %110 = arith.addf %108, %109 : vector<8x128xf32>
    %111 = arith.mulf %110, %106 : vector<8x128xf32>
    %cst_50 = arith.constant 1.42141378 : f32
    %112 = vector.broadcast %cst_50 : f32 to vector<8x128xf32>
    %113 = arith.addf %111, %112 : vector<8x128xf32>
    %114 = arith.mulf %113, %106 : vector<8x128xf32>
    %cst_51 = arith.constant -0.284496725 : f32
    %115 = vector.broadcast %cst_51 : f32 to vector<8x128xf32>
    %116 = arith.addf %114, %115 : vector<8x128xf32>
    %117 = arith.mulf %116, %106 : vector<8x128xf32>
    %cst_52 = arith.constant 0.254829586 : f32
    %118 = vector.broadcast %cst_52 : f32 to vector<8x128xf32>
    %119 = arith.addf %117, %118 : vector<8x128xf32>
    %120 = arith.mulf %119, %106 : vector<8x128xf32>
    %cst_53 = arith.constant 0.000000e+00 : f32
    %121 = vector.broadcast %cst_53 : f32 to vector<8x128xf32>
    %122 = arith.subf %121, %100 : vector<8x128xf32>
    %123 = arith.mulf %122, %100 : vector<8x128xf32>
    %124 = math.exp %123 : vector<8x128xf32>
    %125 = arith.mulf %120, %124 : vector<8x128xf32>
    %cst_54 = arith.constant 1.000000e+00 : f32
    %126 = vector.broadcast %cst_54 : f32 to vector<8x128xf32>
    %127 = arith.subf %126, %125 : vector<8x128xf32>
    %cst_55 = arith.constant 0.000000e+00 : f32
    %128 = vector.broadcast %cst_55 : f32 to vector<8x128xf32>
    %129 = arith.cmpf oge, %99, %128 : vector<8x128xf32>
    %cst_56 = arith.constant 0.000000e+00 : f32
    %130 = vector.broadcast %cst_56 : f32 to vector<8x128xf32>
    %131 = arith.subf %130, %127 : vector<8x128xf32>
    %132 = arith.select %129, %127, %131 : vector<8x128xi1>, vector<8x128xf32>
    %cst_57 = arith.constant 1.000000e+00 : f32
    %133 = vector.broadcast %cst_57 : f32 to vector<8x128xf32>
    %134 = arith.addf %133, %132 : vector<8x128xf32>
    %135 = arith.mulf %97, %134 : vector<8x128xf32>
    %136 = arith.truncf %135 : vector<8x128xf32> to vector<8x128xbf16>
    %c0_58 = arith.constant 0 : index
    %c0_59 = arith.constant 0 : index
    %137 = vector.load %arg13[%c0_58, %c0_59] : memref<128x32xbf16, #tpu.memory_space<vmem>>, vector<128x32xbf16>
    %cst_60 = arith.constant dense<0.000000e+00> : vector<8x32xf32>
    %138 = tpu.matmul %136, %137, %cst_60 {dimension_numbers = #tpu.dot_dimension_numbers<[1], [0], [0], [1], [0, 0, 1, 1], [], []>} : vector<8x128xbf16>, vector<128x32xbf16>, vector<8x32xf32> -> vector<8x32xf32>
    %c0_61 = arith.constant 0 : index
    %c0_62 = arith.constant 0 : index
    %139 = vector.load %arg14[%c0_61, %c0_62] : memref<1x32xf32, #tpu.memory_space<vmem>>, vector<1x32xf32>
    %140 = vector.broadcast %139 : vector<1x32xf32> to vector<8x32xf32>
    %141 = arith.addf %138, %140 : vector<8x32xf32>
    %142 = arith.addf %65, %141 : vector<8x32xf32>
    %c0_63 = arith.constant 0 : index
    %c0_64 = arith.constant 0 : index
    %c0_65 = arith.constant 0 : index
    %143 = vector.load %arg15[%c0_63, %c0_64, %c0_65] : memref<1x8x32xf32, #tpu.memory_space<vmem>>, vector<1x8x32xf32>
    %144 = vector.shape_cast %143 : vector<1x8x32xf32> to vector<8x32xf32>
    %145 = vector.shape_cast %142 : vector<8x32xf32> to vector<1x8x32xf32>
    tpu.vector_store %arg15[%c0_63, %c0_64, %c0_65], %145 {strides = array<i32>} : memref<1x8x32xf32, #tpu.memory_space<vmem>>, vector<1x8x32xf32>,
    return
  }
  func.func @transform_0(%arg0: i32, %arg1: i32) -> (i32, i32, i32) {
    %c0_i32 = arith.constant 0 : i32
    %c0_i32_0 = arith.constant 0 : i32
    %c0_i32_1 = arith.constant 0 : i32
    return %arg0, %c0_i32, %c0_i32_0 : i32, i32, i32
  }
  func.func @transform_1(%arg0: i32, %arg1: i32) -> (i32, i32) {
    %c0_i32 = arith.constant 0 : i32
    %c0_i32_0 = arith.constant 0 : i32
    %c0_i32_1 = arith.constant 0 : i32
    return %c0_i32, %c0_i32_0 : i32, i32
  }
  func.func @transform_2(%arg0: i32, %arg1: i32) -> (i32, i32) {
    %c0_i32 = arith.constant 0 : i32
    %c0_i32_0 = arith.constant 0 : i32
    %c0_i32_1 = arith.constant 0 : i32
    return %c0_i32, %c0_i32_0 : i32, i32
  }
  func.func @transform_3(%arg0: i32, %arg1: i32) -> (i32, i32) {
    %c0_i32 = arith.constant 0 : i32
    %c0_i32_0 = arith.constant 0 : i32
    %c0_i32_1 = arith.constant 0 : i32
    return %c0_i32, %c0_i32_0 : i32, i32
  }
  func.func @transform_4(%arg0: i32, %arg1: i32) -> (i32, i32) {
    %c0_i32 = arith.constant 0 : i32
    %c0_i32_0 = arith.constant 0 : i32
    %c0_i32_1 = arith.constant 0 : i32
    return %c0_i32, %c0_i32_0 : i32, i32
  }
  func.func @transform_5(%arg0: i32, %arg1: i32) -> (i32, i32, i32) {
    %c0_i32 = arith.constant 0 : i32
    %c0_i32_0 = arith.constant 0 : i32
    %c0_i32_1 = arith.constant 0 : i32
    %c0_i32_2 = arith.constant 0 : i32
    return %c0_i32, %c0_i32_0, %c0_i32_1 : i32, i32, i32
  }
  func.func @transform_6(%arg0: i32, %arg1: i32) -> (i32, i32) {
    %c0_i32 = arith.constant 0 : i32
    %c0_i32_0 = arith.constant 0 : i32
    %c0_i32_1 = arith.constant 0 : i32
    return %c0_i32, %c0_i32_0 : i32, i32
  }
  func.func @transform_7(%arg0: i32, %arg1: i32) -> (i32, i32) {
    %c0_i32 = arith.constant 0 : i32
    %c0_i32_0 = arith.constant 0 : i32
    %c0_i32_1 = arith.constant 0 : i32
    return %c0_i32, %c0_i32_0 : i32, i32
  }
  func.func @transform_8(%arg0: i32, %arg1: i32) -> (i32, i32) {
    %c0_i32 = arith.constant 0 : i32
    %c0_i32_0 = arith.constant 0 : i32
    %c0_i32_1 = arith.constant 0 : i32
    return %c0_i32, %c0_i32_0 : i32, i32
  }
  func.func @transform_9(%arg0: i32, %arg1: i32) -> (i32, i32) {
    %c0_i32 = arith.constant 0 : i32
    %c0_i32_0 = arith.constant 0 : i32
    %c0_i32_1 = arith.constant 0 : i32
    return %c0_i32, %c0_i32_0 : i32, i32
  }
  func.func @transform_10(%arg0: i32, %arg1: i32) -> (i32, i32) {
    %c0_i32 = arith.constant 0 : i32
    %c0_i32_0 = arith.constant 0 : i32
    %c0_i32_1 = arith.constant 0 : i32
    return %c0_i32, %c0_i32_0 : i32, i32
  }
  func.func @transform_11(%arg0: i32, %arg1: i32) -> (i32, i32) {
    %c0_i32 = arith.constant 0 : i32
    %c0_i32_0 = arith.constant 0 : i32
    %c0_i32_1 = arith.constant 0 : i32
    return %c0_i32, %c0_i32_0 : i32, i32
  }
  func.func @transform_12(%arg0: i32, %arg1: i32) -> (i32, i32) {
    %c0_i32 = arith.constant 0 : i32
    %c0_i32_0 = arith.constant 0 : i32
    %c0_i32_1 = arith.constant 0 : i32
    return %c0_i32, %c0_i32_0 : i32, i32
  }
  func.func @transform_13(%arg0: i32, %arg1: i32) -> (i32, i32, i32) {
    %c0_i32 = arith.constant 0 : i32
    %c0_i32_0 = arith.constant 0 : i32
    return %arg0, %arg1, %c0_i32 : i32, i32, i32
  }
}

</mosaic_0001>

<bundles_post_ra>
// kernel: tpu_custom_call.1
= control target key start
LH: loop header
LB: loop body
LE: loop exit
PB: predicated region body
PF: predicated region fallthrough
CT: control target
= control target key end

     0   :  { %s2377_s0 = inlined_call_operand.vmem [shape: f32[2,8,32], index: 0, kind: input, shape index: {}]   ;;  %s2378_s1 = inlined_call_operand.vmem [shape: f32[1,32], index: 1, kind: input, shape index: {}]   ;;  %s2379_s2 = inlined_call_operand.vmem [shape: f32[1,32], index: 2, kind: input, shape index: {}]   ;;  %s2380_s3 = inlined_call_operand.vmem [shape: bf16[32,96], index: 3, kind: input, shape index: {}]   ;;  %s2381_s4 = inlined_call_operand.vmem [shape: f32[1,96], index: 4, kind: input, shape index: {}]   ;;  %s2382_s5 = inlined_call_operand.vmem [shape: bf16[4,8,32], index: 5, kind: input, shape index: {}]   ;;  %s2383_s6 = inlined_call_operand.vmem [shape: f32[1,32], index: 6, kind: input, shape index: {}]   ;;  %s2384_s7 = inlined_call_operand.vmem [shape: f32[1,32], index: 7, kind: input, shape index: {}]   ;;  %s2385_s8 = inlined_call_operand.vmem [shape: f32[1,32], index: 8, kind: input, shape index: {}]   ;;  %s2386_s9 = inlined_call_operand.vmem [shape: bf16[32,128], index: 9, kind: input, shape index: {}]   ;;  %s2387_s10 = inlined_call_operand.vmem [shape: f32[1,128], index: 10, kind: input, shape index: {}]   ;;  %s2388_s11 = inlined_call_operand.vmem [shape: bf16[128,32], index: 11, kind: input, shape index: {}]   ;;  %s2389_s12 = inlined_call_operand.vmem [shape: f32[1,32], index: 12, kind: input, shape index: {}]   ;;  %s2390_s13 = inlined_call_operand.hbm [shape: f32[2,8,32], index: 13, kind: output, shape index: {}]  }
   0x1   :  { %2391 = sst [smem:[#allocation8_spill]] %s2377_s0 }
   0x2   :  { %2392 = sst [smem:[#allocation9_spill]] %s2378_s1 }
   0x3   :  { %2393 = sst [smem:[#allocation10_spill]] %s2379_s2 }
   0x4   :  { %2394 = sst [smem:[#allocation11_spill]] %s2380_s3 }
   0x5   :  { %18 = vsyncpa [#allocation6], 0 }
   0x6   :  { %20 = vsyncpa [#allocation6 + $0x1], 0  ;;  %s2065_s25 = smov 0   ;;  %s2067_s26 = smov 0  }
   0x7   :  { %s2069_s27 = smov 0   ;;  %s2071_s28 = smov 0  }
   0x8   :  { %s2073_s29 = smov 0   ;;  %s2075_s30 = smov 0  }
   0x9 LB: > { %s1600_s14 = sadd.s32 4294967295, %s1979_s30   ;;  %s1601_s15 = sadd.s32 4294967294, %s1979_s30   ;;  %s1979_s30 = sphi %s2075_s30, %s26_s30   ;;  %s1975_s29 = sphi %s2073_s29, %s2405_s29   ;;  %s1971_s28 = sphi %s2071_s28, %s2404_s28   ;;  %s1967_s27 = sphi %s2069_s27, %s2403_s27   ;;  %s1963_s26 = sphi %s2067_s26, %s2402_s26   ;;  %s1959_s25 = sphi %s2065_s25, %s2401_s25  }
   0xa   : > { %s38_s16 = sadd.s32 1, %s1975_s29  ;;  %s325_s17 = sadd.s32 1, %s1967_s27 }
   0xb   : > { %p40_p0 = scmp.ge.s32.totalorder %s38_s16, 2  ;;  %p335_p1 = scmp.ne.s32.totalorder %s1967_s27, %s1963_s26 }
   0xc   : > { %p336_p2 = scmp.eq.s32.totalorder %s1600_s14, 1  ;;  %p341_p3 = scmp.ne.s32.totalorder %s1963_s26, %s1959_s25 }
   0xd   : > { %s2407_s16 = smov (%p40_p0, %s38_s16), 0  ;;  %p342_p5 = scmp.eq.s32.totalorder %s1601_s15, 1 }
   0xe   : > { %p2105_p4 = por %p336_p2, %p335_p1  ;;  %s320_s19 = ssub.s32 %s1975_s29, %s2407_s16 }
   0xf   : > { %p1604_p6 = scmp.ge.s32.totalorder %s1979_s30, 1  ;;  %p323_p7 = scmp.eq.s32.totalorder %s320_s19, 0 }
  0x10   : > { %p2112_p8 = por %p342_p5, %p341_p3  ;;  %p403_p9 = scmp.lt.s32.totalorder %s1979_s30, 3 }
  0x11   : > { %s2118_s21 = scalar_select %p323_p7, %s1967_s27, %s325_s17  }
  0x12   : > { %p404_p10 = pnand %p1604_p6, %p403_p9 }
  0x13   : > { %p446_p11 = scmp.lt.s32.totalorder (!%p404_p10), %s1971_s28, 1  ;;  %s2397_s0 = sld [smem:[#allocation8_spill]] (!%p404_p10) }
  0x14   : > { %407 = sbr.rel (%p404_p10) target bundleno = 2394 (0x95a), region = 72  ;;  %s2398_s3 = sld [smem:[#allocation11_spill]] (!%p404_p10) }
  0x15   : > { %s2399_s1 = sld [smem:[#allocation9_spill]] (!%p404_p10)  ;;  %s1984_s24 = smov (!%p404_p10), 120  }
  0x16   : > { %s2400_s2 = sld [smem:[#allocation10_spill]] (!%p404_p10)  ;;  %s1985_s14 = smov (!%p404_p10), 88  }
  0x17   : > { %s1987_s17 = smov (!%p404_p10), 72   ;;  %s1988_s19 = smov (!%p404_p10), 112  }
  0x19   : > { %s447_s22 = scalar_select %p446_p11, %s1971_s28, 1  ;;  %vm458_vm0 = vcmask 261120   ;;  %v1981_v8 = vmov 0.0   ;;  %vm1982_vm1 = vmmov 0   ;;  %v1609_v20 = vld [vmem:[%s2381_s4] ss:$0 sm:$0xff]  ;;  %v818_v48 = vlaneseq }
  0x1a   : > { %v1867_v7 = vld [vmem:[%s2398_s3 + $0x8] sm:$0xff]   ;;  %1691 = vmatprep.subr.bf16.mxu1 %v1981_v8  ;;  %1695 = vmatprep.mubr.msk.bf16.mxu1 %vm1982_vm1, %v1981_v8  ;;  %v1868_v9 = vld [vmem:[%s2398_s3] sm:$0xff]   ;;  %vm556_vm2 = vcmask 60416   ;;  %vm633_vm3 = vcmask 64512   ;;  %vm886_vm5 = vcmask 1043456  }
  0x1b   : > { %s1606_s23 = sshll.u32 %s447_s22, 3  ;;  %1692 = vmatpush3.bf16.msra.mxu1 %v1867_v7  ;;  %1717 = vmatprep.subr.bf16.mxu0 %v1981_v8  ;;  %v1607_v14 = vld [vmem:[%s2399_s1] ss:$0 sm:$0xff]  ;;  %s1989_s22 = smov 104   ;;  %v819_v49 = vshrl.u32 %v818_v48, 7  ;;  %v823_v50 = vand.u32 127, %v818_v48 }
  0x1c   : > { %s449_s15 = scalar_lea.vmem %s2397_s0, %s1606_s23  ;;  %1693 = vmatprep.subr.bf16.mxu1 %v1981_v8  ;;  %1719 = vmatprep.mubr.msk.bf16.mxu0 %vm1982_vm1, %v1981_v8  ;;  %v1608_v16 = vld [vmem:[%s2400_s2] ss:$0 sm:$0xff]  ;;  %s1983_s23 = smov 96  }
  0x1d   : > { %v2125_v0 = vld [vmem:[%s449_s15] sm:$0xff]  ;;  %s1986_s15 = smov 80   ;;  %vm824_vm4 = vcmp.ge.s32.totalorder %v819_v49, %v823_v50  ;;  %s443_s0 = sand.u32 1, %s1963_s26  }
  0x1e   : > { %v459_v1 = vsel %vm458_vm0, %v2125_v0, 0.0 }
  0x1f   : > { %460 = vadd.xlane.f32.xlu0 %v459_v1  ;;  %1694 = vmatpush3.bf16.msra.mxu1 %v1868_v9 }
  0x20   : > { %1699 = vmatprep.subr.bf16.mxu1 %v1981_v8 }
  0xa8   : > { %v461_v2 = vpop.xlane.xlu0 %460 }
  0xa9   : > { %v463_v3 = vmul.f32 0.03125, %v461_v2 }
  0xab   : > { %v464_v4 = vsub.f32 %v2125_v0, %v463_v3 }
  0xad   : > { %v465_v5 = vmul.f32 %v464_v4, %v464_v4 }
  0xaf   : > { %v466_v6 = vsel %vm458_vm0, %v465_v5, 0.0 }
  0xb0   : > { %467 = vadd.xlane.f32.xlu0 %v466_v6 }
 0x139   : > { %v468_v10 = vpop.xlane.xlu0 %467 }
 0x13a   : > { %v469_v11 = vmul.f32 0.03125, %v468_v10 }
 0x13c   : > { %v470_v12 = vadd.f32 1e-05, %v469_v11 }
 0x13e   : > { %1879 = vrsqrt.f32 %v470_v12 }
 0x14b   : > { %v1880_v13 = vpop.eup %1879 }
 0x14c   : > { %v472_v15 = vmul.f32 %v1880_v13, %v464_v4 }
 0x14e   : > { %v479_v17 = vmul.f32 %v1607_v14, %v472_v15 }
 0x150   : > { %v486_v18 = vadd.f32 %v1608_v16, %v479_v17 }
 0x152   : > { %v487_v19 = vpack.c.bf16 %v486_v18, %v486_v18 }
 0x154   : > { %1696 = vmatmul.mubr.msk.bf16.vlgmr.msra.gmra.mxu1 %vm458_vm0, %v487_v19 }
 0x155   : > { %1701 = vmatprep.mubr.msk.bf16.mxu1 %vm1982_vm1, %v1981_v8 }
 0x214   : > { %v548_v21 = vpop.f32.mrf.mxu1 }
 0x215   : > { %v549_v22 = vadd.f32 %v1609_v20, %v548_v21 }
 0x216   : > { %v1697_v23 = vpop.f32.mrf.mxu1 }
 0x217   : > { %v554_v24 = vmul.f32 0.35355338, %v549_v22  ;;  %v2157_v25 = vpack.c.bf16 %v549_v22, %v549_v22 }
 0x218   : > { %v551_v26 = vpop.f32.mrf.mxu1 }
 0x219   : > { %v555_v27 = vpack.c.bf16 %v554_v24, %v554_v24  ;;  %562 = vrot.lane.b32.xlu1 %v2157_v25, %s1983_s23  ;;  %s1990_s23 = smov 64  }
 0x21a   : > { %v1698_v28 = vpop.f32.mrf.mxu1 }
 0x21b   : > { %557 = vst.msk [vmem:[#allocation2] sm:$0xf] %vm556_vm2, %v555_v27  ;;  %573 = vrot.lane.b32.xlu0 %v555_v27, %s1984_s24  ;;  %s1991_s24 = smov 48  }
 0x21d   : > { %578 = vrot.lane.b32.xlu1 %v2157_v25, %s1985_s14  ;;  %s1992_s14 = smov 56  }
 0x221   : > { %593 = vrot.lane.b32.xlu1 %v2157_v25, %s1986_s15  ;;  %s1993_s15 = smov 40  }
 0x222   : > { %v625_v38 = vld [vmem:[#allocation2] sm:$0xf] }
 0x225   : > { %608 = vrot.lane.b32.xlu1 %v2157_v25, %s1987_s17  ;;  %s1605_s17 = sshll.u32 %s443_s0, 3 }
 0x229   : > { %588 = vrot.lane.b32.xlu1 %v555_v27, %s1988_s19  ;;  %s1994_s19 = smov [#allocation5]  }
 0x22d   : > { %603 = vrot.lane.b32.xlu1 %v555_v27, %s1989_s22  ;;  %s1907_s22 = sshll.u32 %s1994_s19, 4  ;;  %s1908_s22 = int_to_ptr.vmem [resolvable:$false] %s1907_s22 }
 0x22e   : > { %s1909_s1 = scalar_lea.vmem %s1908_s22, 256 }
 0x28b   : > { %v563_v29 = vpop.permute.xlu1 %562 }
 0x28c   : > { %565 = vst.msk [vmem:[#allocation3] sm:$0xf] %vm556_vm2, %v563_v29 }
 0x28d   : > { %v574_v30 = vpop.permute.xlu0 %573 }
 0x28e   : > { %577 = vst.msk [vmem:[#allocation2 + $0x4] sm:$0xf] %vm556_vm2, %v574_v30 }
 0x28f   : > { %v579_v31 = vpop.permute.xlu1 %578 }
 0x290   : > { %582 = vst.msk [vmem:[#allocation3 + $0x4] sm:$0xf] %vm556_vm2, %v579_v31 }
 0x293   : > { %v594_v32 = vpop.permute.xlu1 %593  ;;  %v629_v33 = vld [vmem:[#allocation3] sm:$0xf] }
 0x294   : > { %597 = vst.msk [vmem:[#allocation3 + $0x8] sm:$0xf] %vm556_vm2, %v594_v32  ;;  %v638_v34 = vsel %vm633_vm3, %v629_v33, 0 }
 0x295   : > { %1700 = vmatpush3.bf16.xpose.msra.mxu1 %v638_v34  ;;  %v626_v44 = vld [vmem:[#allocation2 + $0x4] sm:$0xf] }
 0x296   : > { %1705 = vmatprep.subr.bf16.mxu1 %v1981_v8 }
 0x297   : > { %v609_v35 = vpop.permute.xlu1 %608  ;;  %v630_v36 = vld [vmem:[#allocation3 + $0x4] sm:$0xf] }
 0x298   : > { %612 = vst.msk [vmem:[#allocation3 + $0xc] sm:$0xf] %vm556_vm2, %v609_v35  ;;  %v684_v39 = vsel %vm633_vm3, %v630_v36, 0 }
 0x29b   : > { %v589_v37 = vpop.permute.xlu1 %588  ;;  %v631_v43 = vld [vmem:[#allocation3 + $0x8] sm:$0xf] }
 0x29c   : > { %592 = vst.msk [vmem:[#allocation2 + $0x8] sm:$0xf] %vm556_vm2, %v589_v37  ;;  %1702 = vmatmul.mubr.msk.bf16.vlgmr.msra.gmra.mxu1 %vm633_vm3, %v625_v38  ;;  %v730_v45 = vsel %vm633_vm3, %v631_v43, 0 }
 0x29d   : > { %1706 = vmatpush3.bf16.xpose.msra.mxu1 %v684_v39  ;;  %1707 = vmatprep.mubr.msk.bf16.mxu1 %vm1982_vm1, %v1981_v8 }
 0x29e   : > { %1711 = vmatprep.subr.bf16.mxu1 %v1981_v8 }
 0x29f   : > { %v604_v40 = vpop.permute.xlu1 %603  ;;  %v632_v41 = vld [vmem:[#allocation3 + $0xc] sm:$0xf] }
 0x2a0   : > { %607 = vst.msk [vmem:[#allocation2 + $0xc] sm:$0xf] %vm556_vm2, %v604_v40  ;;  %v776_v42 = vsel %vm633_vm3, %v632_v41, 0 }
 0x2a1   : > { %1718 = vmatpush3.bf16.xpose.msra.mxu0 %v776_v42 }
 0x2a2   : > { %1729 = vmatprep.subr.bf16.mxu0 %v1981_v8 }
 0x2a3   : > { %v627_v47 = vld [vmem:[#allocation2 + $0x8] sm:$0xf] }
 0x2a4   : > { %1708 = vmatmul.mubr.msk.bf16.vlgmr.msra.gmra.mxu1 %vm633_vm3, %v626_v44 }
 0x2a5   : > { %1712 = vmatpush3.bf16.xpose.msra.mxu1 %v730_v45  ;;  %1713 = vmatprep.mubr.msk.bf16.mxu1 %vm1982_vm1, %v1981_v8 }
 0x2a6   : > { %1723 = vmatprep.subr.bf16.mxu1 %v1981_v8 }
 0x2a7   : > { %v628_v46 = vld [vmem:[#allocation2 + $0xc] sm:$0xf] }
 0x2a8   : > { %1720 = vmatmul.mubr.msk.bf16.vlgmr.msra.gmra.mxu0 %vm633_vm3, %v628_v46 }
 0x2a9   : > { %1731 = vmatprep.mubr.msk.bf16.mxu0 %vm1982_vm1, %v1981_v8 }
 0x2ac   : > { %1714 = vmatmul.mubr.msk.bf16.vlgmr.msra.gmra.mxu1 %vm633_vm3, %v627_v47 }
 0x2ad   : > { %1725 = vmatprep.mubr.msk.bf16.mxu1 %vm1982_vm1, %v1981_v8 }
 0x35c   : > { %v674_v51 = vpop.f32.mrf.mxu1 }
 0x35d   : > { %v827_v52 = vsel %vm824_vm4, %v674_v51, -inf }
 0x35e   : > { %v1703_v53 = vpop.f32.mrf.mxu1  ;;  %v831_v54 = vsel %vm633_vm3, %v827_v52, -inf }
 0x35f   : > { %832 = vmax.xlane.f32.xlu1 %v831_v54 }
 0x360   : > { %v677_v55 = vpop.f32.mrf.mxu1 }
 0x362   : > { %v1704_v56 = vpop.f32.mrf.mxu1 }
 0x364   : > { %v720_v57 = vpop.f32.mrf.mxu1 }
 0x365   : > { %v828_v58 = vsel %vm824_vm4, %v720_v57, -inf }
 0x366   : > { %v1709_v59 = vpop.f32.mrf.mxu1  ;;  %v834_v60 = vsel %vm633_vm3, %v828_v58, -inf }
 0x367   : > { %835 = vmax.xlane.f32.xlu0 %v834_v60 }
 0x368   : > { %v723_v61 = vpop.f32.mrf.mxu1  ;;  %v812_v62 = vpop.f32.mrf.mxu0 }
 0x369   : > { %v830_v63 = vsel %vm824_vm4, %v812_v62, -inf  ;;  %v1069_v61 = vld [vmem:[%s2382_s5] sm:$0xf] }
 0x36a   : > { %v1710_v1 = vpop.f32.mrf.mxu1  ;;  %v1721_v2 = vpop.f32.mrf.mxu0  ;;  %v840_v3 = vsel %vm633_vm3, %v830_v63, -inf  ;;  %v1123_v62 = vsel %vm886_vm5, %v1069_v61, 0 }
 0x36b   : > { %841 = vmax.xlane.f32.xlu0 %v840_v3  ;;  %v1628_v2 = vld [vmem:[%s2382_s5 + $0xc] sm:$0xf] }
 0x36c   : > { %v766_v4 = vpop.f32.mrf.mxu1  ;;  %v815_v5 = vpop.f32.mrf.mxu0 }
 0x36d   : > { %v829_v6 = vsel %vm824_vm4, %v766_v4, -inf  ;;  %v1222_v5 = vsel %vm886_vm5, %v1628_v2, 0 }
 0x36e   : > { %v1715_v7 = vpop.f32.mrf.mxu1  ;;  %v1722_v9 = vpop.f32.mrf.mxu0  ;;  %v837_v10 = vsel %vm633_vm3, %v829_v6, -inf }
 0x36f   : > { %838 = vmax.xlane.f32.xlu1 %v837_v10  ;;  %v1626_v10 = vld [vmem:[%s2382_s5 + $0x8] sm:$0xf] }
 0x370   : > { %v769_v11 = vpop.f32.mrf.mxu1 }
 0x372   : > { %v1716_v12 = vpop.f32.mrf.mxu1 }
 0x380   : > { %566 = vrot.lane.b32.xlu1 %v2157_v25, %s1990_s23  ;;  %s1647_s23 = sshll.u32 %s1971_s28, 7  ;;  %s1514_s28 = scalar_lea.sflag [#allocation6], %s443_s0 }
 0x381   : > { %s2330_s2 = scalar_lea.hbm %s2390_s13, %s1647_s23 }
 0x3e8   : > { %v833_v13 = vpop.xlane.xlu1 %832 }
 0x3e9   : > { %v843_v14 = vsub.f32 %v827_v52, %v833_v13  ;;  %v1172_v13 = vsel %vm886_vm5, %v1626_v10, 0  ;;  %v1877_v10 = vld [vmem:[%s2388_s11 + $0x8] sm:$0xff]  }
 0x3eb   : > { %v847_v15 = vmul.f32 1.442695, %v843_v14 }
 0x3ed   : > { %1881 = vpow2.f32 %v847_v15 }
 0x3f0   : > { %v836_v16 = vpop.xlane.xlu0 %835 }
 0x3f1   : > { %v844_v17 = vsub.f32 %v828_v58, %v836_v16 }
 0x3f3   : > { %v849_v20 = vmul.f32 1.442695, %v844_v17 }
 0x3f4   : > { %v842_v18 = vpop.xlane.xlu0 %841 }
 0x3f5   : > { %v846_v19 = vsub.f32 %v830_v63, %v842_v18  ;;  %v1623_v63 = vld [vmem:[%s2382_s5 + $0x4] sm:$0xf] }
 0x3f6   : > { %v1077_v1 = vsel %vm886_vm5, %v1623_v63, 0 }
 0x3f7   : > { %v853_v21 = vmul.f32 1.442695, %v846_v19 }
 0x3f8   : > { %v839_v22 = vpop.xlane.xlu1 %838 }
 0x3f9   : > { %1883 = vpow2.f32 %v853_v21  ;;  %v845_v33 = vsub.f32 %v829_v6, %v839_v22 }
 0x3fa   : > { %v1882_v23 = vpop.eup %1881  ;;  %1885 = vpow2.f32 %v849_v20 }
 0x3fb   : > { %v855_v24 = vsel %vm633_vm3, %v1882_v23, 0.0  ;;  %v851_v34 = vmul.f32 1.442695, %v845_v33 }
 0x3fc   : > { %856 = vadd.xlane.f32.xlu1 %v855_v24  ;;  %v567_v26 = vpop.permute.xlu1 %566 }
 0x3fd   : > { %569 = vst.msk [vmem:[#allocation4] sm:$0xf] %vm556_vm2, %v567_v26  ;;  %1887 = vpow2.f32 %v851_v34 }
 0x404   : > { %v879_v27 = vld [vmem:[#allocation4] sm:$0xf] }
 0x405   : > { %v888_v28 = vsel %vm886_vm5, %v879_v27, 0 }
 0x406   : > { %v1884_v29 = vpop.eup %1883  ;;  %1724 = vmatpush3.bf16.msra.mxu1 %v888_v28 }
 0x407   : > { %v864_v30 = vsel %vm633_vm3, %v1884_v29, 0.0  ;;  %1735 = vmatprep.subr.bf16.mxu1 %v1981_v8  ;;  %v1886_v31 = vpop.eup %1885 }
 0x408   : > { %865 = vadd.xlane.f32.xlu0 %v864_v30  ;;  %v858_v32 = vsel %vm633_vm3, %v1886_v31, 0.0 }
 0x40a   : > { %v1888_v35 = vpop.eup %1887 }
 0x40b   : > { %v861_v36 = vsel %vm633_vm3, %v1888_v35, 0.0 }
 0x40c   : > { %859 = vadd.xlane.f32.xlu0 %v858_v32 }
 0x40d   : > { %598 = vrot.lane.b32.xlu1 %v2157_v25, %s1991_s24  ;;  %s445_s24 = scalar_lea.vmem [#allocation5], %s1605_s17 }
 0x422   : > { %583 = vrot.lane.b32.xlu0 %v2157_v25, %s1992_s14  ;;  %s1528_s14 = sshll.u32 %s445_s24, 4  ;;  %s2332_s14 = int_to_ptr.vmem [resolvable:$true] %s1528_s14 }
 0x423   : > { %s1903_s17 = scalar_lea.vmem %s2332_s14, 128  ;;  %p1910_p1 = scmp.lt.s32.totalorder %s2332_s14, %s1908_s22 }
 0x424   : > { %p1904_p12 = scmp.ne.s32.totalorder %s2332_s14, %s1903_s17  ;;  %p1911_p2 = scmp.lt.s32.totalorder %s1909_s1, %s1903_s17 }
 0x426   : > { %p1905_p13 = pnand %p1904_p12, %p2105_p4  ;;  %p1912_p3 = por %p1911_p2, %p1910_p1 }
 0x428   : > { %p1906_p0 = pneg %p1905_p13 }
 0x42a   : > { %p1913_p5 = pnand %p1912_p3, %p1906_p0 }
 0x431   : > { %862 = vadd.xlane.f32.xlu1 %v861_v36 }
 0x442   : > { %613 = vrot.lane.b32.xlu1 %v2157_v25, %s1993_s15 }
 0x485   : > { %v857_v37 = vpop.xlane.xlu1 %856 }
 0x486   : > { %1889 = vrcp.f32 %v857_v37 }
 0x489   : > { %v599_v38 = vpop.permute.xlu1 %598 }
 0x48a   : > { %602 = vst.msk [vmem:[#allocation4 + $0x8] sm:$0xf] %vm556_vm2, %v599_v38 }
 0x491   : > { %v866_v39 = vpop.xlane.xlu0 %865  ;;  %v881_v43 = vld [vmem:[#allocation4 + $0x8] sm:$0xf] }
 0x492   : > { %v980_v45 = vsel %vm886_vm5, %v881_v43, 0 }
 0x493   : > { %v1890_v40 = vpop.eup %1889 }
 0x494   : > { %v871_v41 = vmul.f32 %v1890_v40, %v1882_v23 }
 0x495   : > { %v860_v42 = vpop.xlane.xlu0 %859 }
 0x496   : > { %1891 = vrcp.f32 %v860_v42  ;;  %v875_v44 = vpack.c.bf16 %v871_v41, %v871_v41  ;;  %v1630_v41 = vld [vmem:[%s2383_s6] ss:$0 sm:$0xff] }
 0x497   : > { %1893 = vrcp.f32 %v866_v39 }
 0x498   : > { %1726 = vmatmul.mubr.msk.bf16.vlgmr.msra.gmra.mxu1 %vm633_vm3, %v875_v44 }
 0x499   : > { %1736 = vmatpush3.bf16.msra.mxu1 %v980_v45  ;;  %v584_v46 = vpop.permute.xlu0 %583  ;;  %1737 = vmatprep.mubr.msk.bf16.mxu1 %vm1982_vm1, %v1981_v8 }
 0x49a   : > { %587 = vst.msk [vmem:[#allocation4 + $0x4] sm:$0xf] %vm556_vm2, %v584_v46  ;;  %1747 = vmatprep.subr.bf16.mxu1 %v1981_v8 }
 0x4a1   : > { %v880_v25 = vld [vmem:[#allocation4 + $0x4] sm:$0xf] }
 0x4a2   : > { %v934_v47 = vsel %vm886_vm5, %v880_v25, 0 }
 0x4a3   : > { %v1892_v48 = vpop.eup %1891  ;;  %1730 = vmatpush3.bf16.msra.mxu0 %v934_v47 }
 0x4a4   : > { %v872_v49 = vmul.f32 %v1892_v48, %v1886_v31  ;;  %1741 = vmatprep.subr.bf16.mxu0 %v1981_v8  ;;  %v1894_v53 = vpop.eup %1893 }
 0x4a5   : > { %v874_v54 = vmul.f32 %v1894_v53, %v1884_v29 }
 0x4a6   : > { %v876_v50 = vpack.c.bf16 %v872_v49, %v872_v49 }
 0x4a7   : > { %v878_v58 = vpack.c.bf16 %v874_v54, %v874_v54 }
 0x4a8   : > { %1732 = vmatmul.mubr.msk.bf16.vlgmr.msra.gmra.mxu0 %vm633_vm3, %v876_v50 }
 0x4a9   : > { %1743 = vmatprep.mubr.msk.bf16.mxu0 %vm1982_vm1, %v1981_v8 }
 0x4ba   : > { %v863_v51 = vpop.xlane.xlu1 %862 }
 0x4bb   : > { %1895 = vrcp.f32 %v863_v51 }
 0x4be   : > { %v614_v52 = vpop.permute.xlu1 %613 }
 0x4bf   : > { %617 = vst.msk [vmem:[#allocation4 + $0xc] sm:$0xf] %vm556_vm2, %v614_v52 }
 0x4c6   : > { %v882_v55 = vld [vmem:[#allocation4 + $0xc] sm:$0xf] }
 0x4c7   : > { %v1026_v56 = vsel %vm886_vm5, %v882_v55, 0  ;;  %v1869_v55 = vld [vmem:[%s2386_s9 + $0x8] sm:$0xff]  }
 0x4c8   : > { %v1896_v57 = vpop.eup %1895  ;;  %1742 = vmatpush3.bf16.msra.mxu0 %v1026_v56 }
 0x4c9   : > { %v873_v59 = vmul.f32 %v1896_v57, %v1888_v35  ;;  %1753 = vmatprep.subr.bf16.mxu0 %v1981_v8 }
 0x4cb   : > { %1744 = vmatmul.mubr.msk.bf16.vlgmr.msra.gmra.mxu0 %vm633_vm3, %v878_v58  ;;  %v877_v60 = vpack.c.bf16 %v873_v59, %v873_v59 }
 0x4cc   : > { %1755 = vmatprep.mubr.msk.bf16.mxu0 %vm1982_vm1, %v1981_v8  ;;  %1754 = vmatpush3.bf16.msra.mxu0 %v1123_v62  ;;  %v1632_v62 = vld [vmem:[%s2385_s8] ss:$0 sm:$0xff] }
 0x4cd   : > { %1738 = vmatmul.mubr.msk.bf16.vlgmr.msra.gmra.mxu1 %vm633_vm3, %v877_v60  ;;  %1765 = vmatprep.subr.bf16.mxu0 %v1981_v8  ;;  %v1631_v60 = vld [vmem:[%s2384_s7] ss:$0 sm:$0xff] }
 0x4ce   : > { %1749 = vmatprep.mubr.msk.bf16.mxu1 %vm1982_vm1, %v1981_v8  ;;  %1748 = vmatpush3.bf16.msra.mxu1 %v1077_v1 }
 0x4cf   : > { %1759 = vmatprep.subr.bf16.mxu1 %v1981_v8 }
 0x558   : > { %v924_v3 = vpop.f32.mrf.mxu1 }
 0x559   : > { %v1068_v4 = vpack.c.bf16 %v924_v3, %v924_v3  ;;  %v1871_v3 = vld [vmem:[%s2388_s11 + $0x38] sm:$0xff]  }
 0x55a   : > { %v1727_v6 = vpop.f32.mrf.mxu1 }
 0x55b   : > { %1756 = vmatmul.mubr.msk.bf16.vlgmr.msra.gmra.mxu0 %vm633_vm3, %v1068_v4  ;;  %v1872_v4 = vld [vmem:[%s2388_s11 + $0x30] sm:$0xff]   ;;  %v1874_v6 = vld [vmem:[%s2388_s11 + $0x20] sm:$0xff]  }
 0x55c   : > { %v927_v7 = vpop.f32.mrf.mxu1  ;;  %1766 = vmatpush3.bf16.msra.mxu0 %v1222_v5  ;;  %1767 = vmatprep.mubr.msk.bf16.mxu0 %vm1982_vm1, %v1981_v8  ;;  %v1873_v5 = vld [vmem:[%s2388_s11 + $0x28] sm:$0xff]  }
 0x55d   : > { %1779 = vmatprep.subr.bf16.mxu0 %v1981_v8  ;;  %v1875_v7 = vld [vmem:[%s2388_s11 + $0x18] sm:$0xff]  }
 0x55e   : > { %v1728_v9 = vpop.f32.mrf.mxu1 }
 0x55f   : > { %v1876_v9 = vld [vmem:[%s2388_s11 + $0x10] sm:$0xff]  }
 0x568   : > { %v970_v11 = vpop.f32.mrf.mxu0 }
 0x569   : > { %v1070_v12 = vpack.c.bf16 %v970_v11, %v970_v11  ;;  %v1878_v11 = vld [vmem:[%s2388_s11] sm:$0xff]  }
 0x56a   : > { %v1733_v14 = vpop.f32.mrf.mxu0 }
 0x56b   : > { %1750 = vmatmul.mubr.msk.bf16.vlgmr.msra.gmra.mxu1 %vm633_vm3, %v1070_v12  ;;  %v1633_v12 = vld [vmem:[%s2387_s10] ss:$0 sm:$0xff] }
 0x56c   : > { %v973_v15 = vpop.f32.mrf.mxu0  ;;  %1760 = vmatpush3.bf16.msra.mxu1 %v1172_v13  ;;  %1761 = vmatprep.mubr.msk.bf16.mxu1 %vm1982_vm1, %v1981_v8 }
 0x56d   : > { %1771 = vmatprep.subr.bf16.mxu1 %v1981_v8 }
 0x56e   : > { %v1734_v16 = vpop.f32.mrf.mxu0 }
 0x58b   : > { %v1062_v17 = vpop.f32.mrf.mxu0 }
 0x58c   : > { %v1215_v18 = vpack.c.bf16 %v1062_v17, %v1062_v17 }
 0x58d   : > { %v1016_v19 = vpop.f32.mrf.mxu1  ;;  %v1745_v20 = vpop.f32.mrf.mxu0 }
 0x58e   : > { %v1165_v21 = vpack.c.bf16 %v1016_v19, %v1016_v19  ;;  %1768 = vmatmul.mubr.msk.bf16.vlgmr.msra.gmra.mxu0 %vm633_vm3, %v1215_v18 }
 0x58f   : > { %v1739_v22 = vpop.f32.mrf.mxu1  ;;  %v1065_v23 = vpop.f32.mrf.mxu0  ;;  %1795 = vmatprep.mubr.msk.bf16.mxu0 %vm1982_vm1, %v1981_v8  ;;  %1780 = vmatpush3.bf16.msra.mxu0 %v1871_v3 }
 0x590   : > { %1762 = vmatmul.mubr.msk.bf16.vlgmr.msra.gmra.mxu1 %vm633_vm3, %v1165_v21  ;;  %1781 = vmatprep.subr.bf16.mxu0 %v1981_v8 }
 0x591   : > { %v1019_v24 = vpop.f32.mrf.mxu1  ;;  %v1746_v26 = vpop.f32.mrf.mxu0  ;;  %1775 = vmatprep.mubr.msk.bf16.mxu1 %vm1982_vm1, %v1981_v8  ;;  %1772 = vmatpush3.bf16.msra.mxu1 %v1869_v55 }
 0x592   : > { %1773 = vmatprep.subr.bf16.mxu1 %v1981_v8 }
 0x593   : > { %v1740_v27 = vpop.f32.mrf.mxu1  ;;  %1782 = vmatpush3.bf16.msra.mxu0 %v1872_v4 }
 0x594   : > { %1783 = vmatprep.subr.bf16.mxu0 %v1981_v8 }
 0x597   : > { %1784 = vmatpush3.bf16.msra.mxu0 %v1873_v5 }
 0x598   : > { %1785 = vmatprep.subr.bf16.mxu0 %v1981_v8 }
 0x59b   : > { %1786 = vmatpush3.bf16.msra.mxu0 %v1874_v6 }
 0x59c   : > { %1787 = vmatprep.subr.bf16.mxu0 %v1981_v8 }
 0x59f   : > { %1788 = vmatpush3.bf16.msra.mxu0 %v1875_v7 }
 0x5a0   : > { %1789 = vmatprep.subr.bf16.mxu0 %v1981_v8 }
 0x5a3   : > { %1790 = vmatpush3.bf16.msra.mxu0 %v1876_v9 }
 0x5a4   : > { %1791 = vmatprep.subr.bf16.mxu0 %v1981_v8 }
 0x5a7   : > { %1792 = vmatpush3.bf16.msra.mxu0 %v1877_v10 }
 0x5a8   : > { %1793 = vmatprep.subr.bf16.mxu0 %v1981_v8 }
 0x5ab   : > { %1794 = vmatpush3.bf16.msra.mxu0 %v1878_v11 }
 0x61b   : > { %v1159_v28 = vpop.f32.mrf.mxu0 }
 0x61d   : > { %v1757_v29 = vpop.f32.mrf.mxu0 }
 0x61f   : > { %v1162_v30 = vpop.f32.mrf.mxu0 }
 0x621   : > { %v1758_v31 = vpop.f32.mrf.mxu0 }
 0x62b   : > { %v1113_v32 = vpop.f32.mrf.mxu1 }
 0x62c   : > { %v1160_v37 = vadd.f32 %v1159_v28, %v1113_v32 }
 0x62d   : > { %v1751_v33 = vpop.f32.mrf.mxu1 }
 0x62f   : > { %v1116_v34 = vpop.f32.mrf.mxu1 }
 0x631   : > { %v1752_v35 = vpop.f32.mrf.mxu1 }
 0x64e   : > { %v1258_v36 = vpop.f32.mrf.mxu0 }
 0x650   : > { %v1208_v38 = vpop.f32.mrf.mxu1  ;;  %v1769_v39 = vpop.f32.mrf.mxu0 }
 0x651   : > { %v1214_v40 = vadd.f32 %v1208_v38, %v1160_v37 }
 0x652   : > { %v1763_v42 = vpop.f32.mrf.mxu1  ;;  %v1261_v43 = vpop.f32.mrf.mxu0 }
 0x653   : > { %v1264_v44 = vadd.f32 %v1258_v36, %v1214_v40 }
 0x654   : > { %v1211_v45 = vpop.f32.mrf.mxu1  ;;  %v1770_v46 = vpop.f32.mrf.mxu0 }
 0x655   : > { %v1272_v25 = vadd.f32 %v1630_v41, %v1264_v44  ;;  %v1637_v44 = vld [vmem:[%s2389_s12] ss:$0 sm:$0xff] }
 0x656   : > { %v1764_v47 = vpop.f32.mrf.mxu1 }
 0x657   : > { %v2267_v48 = vadd.f32 %v1272_v25, %v2125_v0  ;;  %v1870_v0 = vld [vmem:[%s2386_s9] sm:$0xff]  }
 0x658   : > { %1774 = vmatpush3.bf16.msra.mxu1 %v1870_v0 }
 0x659   : > { %v1277_v49 = vsel %vm458_vm0, %v2267_v48, 0.0 }
 0x65a   : > { %1278 = vadd.xlane.f32.xlu0 %v1277_v49 }
 0x6e3   : > { %v1279_v50 = vpop.xlane.xlu0 %1278 }
 0x6e4   : > { %v1281_v51 = vmul.f32 0.03125, %v1279_v50 }
 0x6e6   : > { %v1282_v52 = vsub.f32 %v2267_v48, %v1281_v51 }
 0x6e8   : > { %v1283_v53 = vmul.f32 %v1282_v52, %v1282_v52 }
 0x6ea   : > { %v1284_v54 = vsel %vm458_vm0, %v1283_v53, 0.0 }
 0x6eb   : > { %1285 = vadd.xlane.f32.xlu1 %v1284_v54 }
 0x774   : > { %v1286_v56 = vpop.xlane.xlu1 %1285 }
 0x775   : > { %v1287_v57 = vmul.f32 0.03125, %v1286_v56 }
 0x777   : > { %v1288_v58 = vadd.f32 1e-05, %v1287_v57 }
 0x779   : > { %1897 = vrsqrt.f32 %v1288_v58 }
 0x786   : > { %v1898_v59 = vpop.eup %1897 }
 0x787   : > { %v1290_v61 = vmul.f32 %v1898_v59, %v1282_v52 }
 0x789   : > { %v1297_v63 = vmul.f32 %v1631_v60, %v1290_v61 }
 0x78b   : > { %v1304_v1 = vadd.f32 %v1632_v62, %v1297_v63 }
 0x78d   : > { %v1305_v2 = vpack.c.bf16 %v1304_v1, %v1304_v1 }
 0x78f   : > { %1776 = vmatmul.mubr.msk.bf16.vlgmr.msra.gmra.mxu1 %vm458_vm0, %v1305_v2 }
 0x84f   : > { %v1366_v13 = vpop.f32.mrf.mxu1 }
 0x850   : > { %v1367_v14 = vadd.f32 %v1633_v12, %v1366_v13 }
 0x851   : > { %v1777_v15 = vpop.f32.mrf.mxu1 }
 0x852   : > { %v1373_v16 = vmul.f32 0.70710677, %v1367_v14  ;;  %v1372_v40 = vmul.f32 0.5, %v1367_v14 }
 0x853   : > { %v1369_v17 = vpop.f32.mrf.mxu1 }
 0x854   : > { %v1374_v18 = vand.u32 2147483647, %v1373_v16  ;;  %vm1394_vm6 = vcmp.ge.f32.partialorder %v1373_v16, 0.0 }
 0x855   : > { %v1778_v19 = vpop.f32.mrf.mxu1 }
 0x856   : > { %v1375_v20 = vmul.f32 0.3275911, %v1374_v18  ;;  %v1388_v8 = vsub.f32 0.0, %v1374_v18 }
 0x858   : > { %v1376_v21 = vadd.f32 1.0, %v1375_v20  ;;  %v1389_v22 = vmul.f32 %v1388_v8, %v1374_v18 }
 0x85a   : > { %1899 = vrcp.f32 %v1376_v21  ;;  %v1390_v26 = vmul.f32 1.442695, %v1389_v22 }
 0x85c   : > { %1901 = vpow2.f32 %v1390_v26 }
 0x867   : > { %v1900_v23 = vpop.eup %1899 }
 0x868   : > { %v1379_v24 = vmul.f32 1.0614054, %v1900_v23 }
 0x869   : > { %v1902_v35 = vpop.eup %1901 }
 0x86a   : > { %v1380_v27 = vadd.f32 -1.4531521, %v1379_v24 }
 0x86c   : > { %v1381_v28 = vmul.f32 %v1900_v23, %v1380_v27 }
 0x86e   : > { %v1382_v29 = vadd.f32 1.4214138, %v1381_v28 }
 0x870   : > { %v1383_v30 = vmul.f32 %v1900_v23, %v1382_v29 }
 0x872   : > { %v1384_v31 = vadd.f32 -0.28449672, %v1383_v30 }
 0x874   : > { %v1385_v32 = vmul.f32 %v1900_v23, %v1384_v31 }
 0x876   : > { %v1386_v33 = vadd.f32 0.2548296, %v1385_v32 }
 0x878   : > { %v1387_v34 = vmul.f32 %v1900_v23, %v1386_v33 }
 0x87a   : > { %v1392_v36 = vmul.f32 %v1902_v35, %v1387_v34 }
 0x87c   : > { %v1393_v37 = vsub.f32 1.0, %v1392_v36 }
 0x87e   : > { %v1395_v38 = vsub.f32 0.0, %v1393_v37 }
 0x880   : > { %v1396_v39 = vsel %vm1394_vm6, %v1393_v37, %v1395_v38 }
 0x881   : > { %v1397_v41 = vadd.f32 1.0, %v1396_v39 }
 0x883   : > { %v1398_v42 = vmul.f32 %v1397_v41, %v1372_v40 }
 0x885   : > { %v1399_v43 = vpack.c.bf16 %v1398_v42, %v1398_v42 }
 0x887   : > { %1796 = vmatmul.mubr.bf16.vlgmr.msra.gmra.mxu0 %v1399_v43 }
 0x947   : > { %v1505_v45 = vpop.f32.mrf.mxu0 }
 0x948   : > { %v1506_v46 = vadd.f32 %v1637_v44, %v1505_v45 }
 0x949   : > { %v1797_v25 = vpop.f32.mrf.mxu0 }
 0x94a   : > { %v1511_v47 = vadd.f32 %v1506_v46, %v2267_v48 }
 0x94b   : > { %v1508_v49 = vpop.f32.mrf.mxu0 }
 0x94c   : > { %1512 = vst.msk [vmem:[%s445_s24] sm:$0xff] %vm458_vm0, %v1511_v47 }
 0x94d   : > { %v1798_v50 = vpop.f32.mrf.mxu0 }
 0x94e   : > { %1916 = shalt.err (!%p1913_p5)
}
 0x94f   : > { %s1917_s23 = scalar_lea.hbm %s2330_s2, 128  ;;  %s1921_s15 = scalar_lea.hbm %s2390_s13, 256 }
 0x950   : > { %p1918_p6 = scmp.ne.s32.totalorder %s2330_s2, %s1917_s23  ;;  %p1922_p10 = scmp.lt.s32.totalorder %s2330_s2, %s2390_s13 }
 0x951   : > { %p1923_p11 = scmp.lt.s32.totalorder %s1921_s15, %s1917_s23 }
 0x952   : > { %p1919_p7 = pnand %p1918_p6, %p2105_p4 }
 0x953   : > { %p1924_p12 = por %p1923_p11, %p1922_p10 }
 0x954   : > { %p1920_p9 = pneg %p1919_p7 }
 0x956   : > { %p1925_p13 = pnand %p1924_p12, %p1920_p9 }
 0x958   : > { %1928 = shalt.err (!%p1925_p13)
}
 0x959   : > { %1799 = dma.vmem_to_hbm [thread:$0]  (%p2105_p4), %s2332_s14, 128, %s2330_s2, %s1514_s28  }
 0x95a PF: > { %p1805_p0 = scmp.ge.s32.totalorder %s1979_s30, 2  ;;  %s1540_s17 = sand.u32 1, %s1959_s25  }
 0x95b   : > { %s1541_s3 = scalar_lea.sflag [#allocation6], %s1540_s17 }
 0x95c   : > { %p1802_p1 = pnand %p1805_p0, %p2112_p8 }
 0x95e   : > { %p1803_p2 = pneg %p1802_p1 }
 0x960   : > { %1954 = dma.done.wait (%p1803_p2), %s1541_s3, 128  }
 0x961   : > { %1956 = vsyncadd (%p1803_p2), %s1541_s3, 4294967168  ;;  %s26_s30 = sadd.s32 1, %s1979_s30   ;;  %s2401_s25 = smov %s1963_s26 }
 0x962   : > { %p23_p3 = scmp.ge.s32.totalorder %s26_s30, 4   ;;  %s2402_s26 = smov %s1967_s27 }
 0x963   : > { %s2403_s27 = smov %s2118_s21  ;;  %s2404_s28 = smov %s1975_s29 }
 0x964   : > { %s2405_s29 = smov %s2407_s16  ;;  %25 = sbr.rel (!%p23_p3) target bundleno = 9 (0x9), region = 125 }
 0x969   :  { %1546 = vsyncpa [#allocation6], 1 }
 0x96a   :  { %1548 = vsyncpa [#allocation6 + $0x1], 1 }

</bundles_post_ra>
